<compile_context>
chip_gen: v7x
topology: tpu7x:2x2x1
jax: 0.10.0
libtpu: 0.0.40
codegen_flags: <defaults>
</compile_context>

<pallas_src>
import jax
import jax.numpy as jnp
from jax.experimental import pallas as pl
from jax.experimental.pallas import tpu as pltpu


def _round_up(n, m):
    return ((n + m - 1) // m) * m


def autoencoder_kernel(x_ref, w1t_ref, b1_ref, w2t_ref, b2_ref, o_ref):
    # Cast x -> bf16 in-kernel (idle VPU slots; avoids a wrapper HBM pass).
    x = x_ref[...].astype(jnp.bfloat16)                               # (TB, d_in)
    # Encoder: Linear + ReLU (bf16 x bf16 MXU, f32 accumulation + epilogue).
    h = jnp.dot(x, w1t_ref[...], preferred_element_type=jnp.float32)  # (TB, d_enc_pad)
    h = jnp.maximum(h + b1_ref[...], 0.0)
    # Decoder: Linear + Sigmoid.
    y = jnp.dot(h.astype(jnp.bfloat16), w2t_ref[...],
                preferred_element_type=jnp.float32)                   # (TB, d_in)
    y = y + b2_ref[...]
    # sigmoid(y) = 1 / (1 + exp(-y)): exp and approx reciprocal both use the EUP.
    o_ref[...] = pl.reciprocal(1.0 + jnp.exp(-y), approx=True).astype(o_ref.dtype)


def prepare_params(w1, b1, w2, b2):
    """One-time parameter prep (hoisted out of the per-call path).

    PyTorch layout:  w1: (encoding_dim, input_dim), w2: (input_dim, encoding_dim).
    Returns (W1^T, b1, W2^T, b2) with weights in bf16 and the encoding dim
    zero-padded to a lane-dense multiple of 128 (exact: relu(0)=0 contributes
    nothing through the zero rows of W2^T).
    """
    d_enc, d_in = w1.shape
    d_enc_pad = max(128, _round_up(d_enc, 128))
    w1t = jnp.zeros((d_in, d_enc_pad), jnp.bfloat16).at[:, :d_enc].set(
        w1.T.astype(jnp.bfloat16))
    b1r = jnp.zeros((1, d_enc_pad), jnp.float32).at[:, :d_enc].set(
        b1.astype(jnp.float32))
    w2t = jnp.zeros((d_enc_pad, d_in), jnp.bfloat16).at[:d_enc, :].set(
        w2.T.astype(jnp.bfloat16))
    b2r = b2.reshape(1, d_in).astype(jnp.float32)
    return w1t, b1r, w2t, b2r


def autoencoder_forward(x, params, *, max_tile_b=1024, out_dtype=None):
    """out = sigmoid(relu(x @ W1.T + b1) @ W2.T + b2), x: (B, input_dim)."""
    w1t, b1r, w2t, b2r = params
    B, d_in = x.shape
    d_enc_pad = w1t.shape[1]
    out_dtype = x.dtype if out_dtype is None else jnp.dtype(out_dtype)
    x_bytes = jnp.dtype(x.dtype).itemsize
    out_bytes = jnp.dtype(out_dtype).itemsize

    try:
        kind = jax.devices()[0].device_kind.lower()
    except Exception:  # pragma: no cover - defensive
        kind = ""
    is_v7 = "7" in kind  # v7x: 2 TensorCores/chip, 64 MiB VMEM per TC

    # --- batch tile size ------------------------------------------------------
    # Largest 16-row-aligned tile that fits a conservative VMEM budget for the
    # streamed operands (x + out, double-buffered) plus f32 intermediates.
    tile_budget = (12 if is_v7 else 24) * 1024 * 1024
    per_row = 2 * d_in * (x_bytes + out_bytes) + 4 * d_enc_pad * 4
    tb_cap = max((tile_budget // per_row) // 16 * 16, 16)
    tb = min(_round_up(min(max_tile_b, B), 16), tb_cap)
    if is_v7 and B > 16:
        # Keep >= 2 parallel grid steps so both TensorCores get work.
        tb = min(tb, _round_up(pl.cdiv(B, 2), 16))
    grid = (pl.cdiv(B, tb),)  # ragged last block: Pallas masks the writeback

    # --- VMEM limit from the real footprint (headroom; v7x has 64 MiB/TC) ----
    footprint = (2 * tb * d_in * (x_bytes + out_bytes)     # x + out, double-buffered
                 + 2 * 2 * d_in * d_enc_pad * 2            # W1^T, W2^T (bf16)
                 + 2 * 4 * (d_in + d_enc_pad) * 8          # biases (sublane-padded)
                 + 4 * tb * d_enc_pad * 4)                 # h / epilogue temporaries
    vmem_cap = (56 if is_v7 else 112) * 1024 * 1024
    vmem_limit = int(min(max(2 * footprint, 32 * 1024 * 1024), vmem_cap))

    cost = pl.CostEstimate(
        flops=4 * B * d_in * d_enc_pad,                    # two matmuls
        transcendentals=B * d_in,                          # exp in sigmoid
        bytes_accessed=(B * d_in * (x_bytes + out_bytes)
                        + 2 * d_in * d_enc_pad * 2 + (d_in + d_enc_pad) * 4),
    )

    return pl.pallas_call(
        autoencoder_kernel,
        out_shape=jax.ShapeDtypeStruct((B, d_in), out_dtype),
        grid_spec=pltpu.PrefetchScalarGridSpec(
            num_scalar_prefetch=0,
            grid=grid,
            in_specs=[
                pl.BlockSpec((tb, d_in), lambda i: (i, 0)),           # x tile
                pl.BlockSpec((d_in, d_enc_pad), lambda i: (0, 0)),    # W1^T (resident)
                pl.BlockSpec((1, d_enc_pad), lambda i: (0, 0)),       # b1
                pl.BlockSpec((d_enc_pad, d_in), lambda i: (0, 0)),    # W2^T (resident)
                pl.BlockSpec((1, d_in), lambda i: (0, 0)),            # b2
            ],
            out_specs=pl.BlockSpec((tb, d_in), lambda i: (i, 0)),
        ),
        compiler_params=pltpu.CompilerParams(
            dimension_semantics=("parallel",),
            vmem_limit_bytes=vmem_limit,
        ),
        cost_estimate=cost,
    )(x, w1t, b1r, w2t, b2r)


def reference_forward(x, w1, b1, w2, b2):
    h = jnp.maximum(x @ w1.T + b1, 0.0)
    return jax.nn.sigmoid(h @ w2.T + b2)


if __name__ == "__main__":
    input_dim, encoding_dim = 128, 32
    key = jax.random.PRNGKey(0)
    kx, k1, k2, k3, k4 = jax.random.split(key, 5)

    # Deterministic PyTorch-style Linear init: U(-1/sqrt(fan_in), 1/sqrt(fan_in)).
    bound1 = 1.0 / (input_dim ** 0.5)
    w1 = jax.random.uniform(k1, (encoding_dim, input_dim), jnp.float32, -bound1, bound1)
    b1 = jax.random.uniform(k2, (encoding_dim,), jnp.float32, -bound1, bound1)
    bound2 = 1.0 / (encoding_dim ** 0.5)
    w2 = jax.random.uniform(k3, (input_dim, encoding_dim), jnp.float32, -bound2, bound2)
    b2 = jax.random.uniform(k4, (input_dim,), jnp.float32, -bound2, bound2)

    params = prepare_params(w1, b1, w2, b2)

    # Tile-multiple batch plus a ragged-tail batch (exercises the masked
    # partial-block writeback that replaced the wrapper-side pad/slice).
    for batch in (512, 300):
        x = jax.random.normal(kx, (batch, input_dim), dtype=jnp.float32)
        out = jax.block_until_ready(autoencoder_forward(x, params))
        ref = reference_forward(x, w1, b1, w2, b2)
        assert out.shape == (batch, input_dim), out.shape
        # bf16 matmul operands (f32 accumulation/epilogue) vs pure-f32 reference.
        err = float(jnp.max(jnp.abs(out.astype(jnp.float32) - ref)))
        assert err < 2e-2, (batch, err)

    print("KERNEL_OK")
</pallas_src>

<mosaic_0001>
module attributes {stable_mosaic.version = 11 : i64} {
  func.func @autoencoder_kernel(%arg0: i32, %arg1: memref<512x128xf32, #tpu.memory_space<vmem>>, %arg2: memref<128x128xbf16, #tpu.memory_space<vmem>>, %arg3: memref<1x128xf32, #tpu.memory_space<vmem>>, %arg4: memref<128x128xbf16, #tpu.memory_space<vmem>>, %arg5: memref<1x128xf32, #tpu.memory_space<vmem>>, %arg6: memref<512x128xf32, #tpu.memory_space<vmem>>) attributes {dimension_semantics = [#tpu.dimension_semantics<parallel>], iteration_bounds = array<i64: 1>, scalar_prefetch = 0 : i64, scratch_operands = 0 : i64, tpu.core_type = #tpu.core_type<tc>, window_params = [{transform_indices = @transform_0, window_bounds = array<i64: 512, 128>}, {pipeline_mode = #tpu.pipeline_mode<synchronous>, transform_indices = @transform_1, window_bounds = array<i64: 128, 128>}, {pipeline_mode = #tpu.pipeline_mode<synchronous>, transform_indices = @transform_2, window_bounds = array<i64: 1, 128>}, {pipeline_mode = #tpu.pipeline_mode<synchronous>, transform_indices = @transform_3, window_bounds = array<i64: 128, 128>}, {pipeline_mode = #tpu.pipeline_mode<synchronous>, transform_indices = @transform_4, window_bounds = array<i64: 1, 128>}, {transform_indices = @transform_5, window_bounds = array<i64: 512, 128>}]} {
    %c0 = arith.constant 0 : index
    %c0_0 = arith.constant 0 : index
    %0 = vector.load %arg1[%c0, %c0_0] : memref<512x128xf32, #tpu.memory_space<vmem>>, vector<512x128xf32>
    %1 = arith.truncf %0 : vector<512x128xf32> to vector<512x128xbf16>
    %c0_1 = arith.constant 0 : index
    %c0_2 = arith.constant 0 : index
    %2 = vector.load %arg2[%c0_1, %c0_2] : memref<128x128xbf16, #tpu.memory_space<vmem>>, vector<128x128xbf16>
    %cst = arith.constant dense<0.000000e+00> : vector<512x128xf32>
    %3 = tpu.matmul %1, %2, %cst {dimension_numbers = #tpu.dot_dimension_numbers<[1], [0], [0], [1], [0, 0, 1, 1], [], []>} : vector<512x128xbf16>, vector<128x128xbf16>, vector<512x128xf32> -> vector<512x128xf32>
    %c0_3 = arith.constant 0 : index
    %c0_4 = arith.constant 0 : index
    %4 = vector.load %arg3[%c0_3, %c0_4] : memref<1x128xf32, #tpu.memory_space<vmem>>, vector<1x128xf32>
    %5 = vector.broadcast %4 : vector<1x128xf32> to vector<512x128xf32>
    %6 = arith.addf %3, %5 : vector<512x128xf32>
    %cst_5 = arith.constant 0.000000e+00 : f32
    %7 = vector.broadcast %cst_5 : f32 to vector<512x128xf32>
    %8 = arith.maximumf %6, %7 : vector<512x128xf32>
    %9 = arith.truncf %8 : vector<512x128xf32> to vector<512x128xbf16>
    %c0_6 = arith.constant 0 : index
    %c0_7 = arith.constant 0 : index
    %10 = vector.load %arg4[%c0_6, %c0_7] : memref<128x128xbf16, #tpu.memory_space<vmem>>, vector<128x128xbf16>
    %cst_8 = arith.constant dense<0.000000e+00> : vector<512x128xf32>
    %11 = tpu.matmul %9, %10, %cst_8 {dimension_numbers = #tpu.dot_dimension_numbers<[1], [0], [0], [1], [0, 0, 1, 1], [], []>} : vector<512x128xbf16>, vector<128x128xbf16>, vector<512x128xf32> -> vector<512x128xf32>
    %c0_9 = arith.constant 0 : index
    %c0_10 = arith.constant 0 : index
    %12 = vector.load %arg5[%c0_9, %c0_10] : memref<1x128xf32, #tpu.memory_space<vmem>>, vector<1x128xf32>
    %13 = vector.broadcast %12 : vector<1x128xf32> to vector<512x128xf32>
    %14 = arith.addf %11, %13 : vector<512x128xf32>
    %cst_11 = arith.constant 0.000000e+00 : f32
    %15 = vector.broadcast %cst_11 : f32 to vector<512x128xf32>
    %16 = arith.subf %15, %14 : vector<512x128xf32>
    %17 = math.exp %16 : vector<512x128xf32>
    %cst_12 = arith.constant 1.000000e+00 : f32
    %18 = vector.broadcast %cst_12 : f32 to vector<512x128xf32>
    %19 = arith.addf %18, %17 : vector<512x128xf32>
    %20 = tpu.reciprocal %19 {approx = true} : vector<512x128xf32> -> vector<512x128xf32>
    %c0_13 = arith.constant 0 : index
    %c0_14 = arith.constant 0 : index
    %21 = vector.load %arg6[%c0_13, %c0_14] : memref<512x128xf32, #tpu.memory_space<vmem>>, vector<512x128xf32>
    tpu.vector_store %arg6[%c0_13, %c0_14], %20 {strides = array<i32>} : memref<512x128xf32, #tpu.memory_space<vmem>>, vector<512x128xf32>,
    return
  }
  func.func @transform_0(%arg0: i32) -> (i32, i32) {
    %c0_i32 = arith.constant 0 : i32
    %c0_i32_0 = arith.constant 0 : i32
    return %arg0, %c0_i32 : i32, i32
  }
  func.func @transform_1(%arg0: i32) -> (i32, i32) {
    %c0_i32 = arith.constant 0 : i32
    %c0_i32_0 = arith.constant 0 : i32
    %c0_i32_1 = arith.constant 0 : i32
    return %c0_i32, %c0_i32_0 : i32, i32
  }
  func.func @transform_2(%arg0: i32) -> (i32, i32) {
    %c0_i32 = arith.constant 0 : i32
    %c0_i32_0 = arith.constant 0 : i32
    %c0_i32_1 = arith.constant 0 : i32
    return %c0_i32, %c0_i32_0 : i32, i32
  }
  func.func @transform_3(%arg0: i32) -> (i32, i32) {
    %c0_i32 = arith.constant 0 : i32
    %c0_i32_0 = arith.constant 0 : i32
    %c0_i32_1 = arith.constant 0 : i32
    return %c0_i32, %c0_i32_0 : i32, i32
  }
  func.func @transform_4(%arg0: i32) -> (i32, i32) {
    %c0_i32 = arith.constant 0 : i32
    %c0_i32_0 = arith.constant 0 : i32
    %c0_i32_1 = arith.constant 0 : i32
    return %c0_i32, %c0_i32_0 : i32, i32
  }
  func.func @transform_5(%arg0: i32) -> (i32, i32) {
    %c0_i32 = arith.constant 0 : i32
    %c0_i32_0 = arith.constant 0 : i32
    return %arg0, %c0_i32 : i32, i32
  }
}

</mosaic_0001>

<bundles_post_ra>
// kernel: tpu_custom_call.1
= control target key start
LH: loop header
LB: loop body
LE: loop exit
PB: predicated region body
PF: predicated region fallthrough
CT: control target
= control target key end

     0   :  { %10 = vsyncpa [#allocation3], 0  ;;  %s2243_s0 = inlined_call_operand.hbm [shape: f32[512,128], index: 0, kind: input, shape index: {}]   ;;  %s2244_s1 = inlined_call_operand.hbm [shape: bf16[128,128], index: 1, kind: input, shape index: {}]   ;;  %s2245_s2 = inlined_call_operand.vmem [shape: f32[1,128], index: 2, kind: input, shape index: {}]   ;;  %s2246_s3 = inlined_call_operand.hbm [shape: bf16[128,128], index: 3, kind: input, shape index: {}]   ;;  %s2247_s4 = inlined_call_operand.vmem [shape: f32[1,128], index: 4, kind: input, shape index: {}]   ;;  %s2248_s5 = inlined_call_operand.hbm [shape: f32[512,128], index: 5, kind: output, shape index: {}]  }
   0x1   :  { %11 = vsyncpa [#allocation6], 0 }
   0x2   :  { %12 = vsyncpa [#allocation4], 0  ;;  %s2010_s18 = smov [#allocation5]   ;;  %s1916_s22 = scalar_lea.hbm %s2244_s1, 1024 }
   0x3   :  { %s30_s19 = sshll.u32 %s2010_s18, 4  ;;  %p1917_p0 = scmp.ne.s32.totalorder %s2244_s1, %s1916_s22  ;;  %s31_s19 = int_to_ptr.vmem [resolvable:$true] %s30_s19 }
   0x4   :  { %p1920_p1 = scmp.lt.u32.totalorder %s1916_s22, %s2244_s1 }
   0x6   :  { %p1922_p2 = pnand %p1920_p1, %p1917_p0 }
   0x8   :  { %1925 = shalt.err (!%p1922_p2)
}
   0x9   :  { %s1926_s27 = scalar_lea.vmem %s31_s19, 1024  ;;  %p1931_p4 = scmp.lt.s32.totalorder %s31_s19, %s31_s19 }
   0xa   :  { %p1927_p3 = scmp.ne.s32.totalorder %s31_s19, %s1926_s27  ;;  %p1932_p5 = scmp.lt.s32.totalorder %s1926_s27, %s1926_s27 }
   0xc   :  { %p1933_p6 = por %p1932_p5, %p1931_p4 }
   0xe   :  { %p1934_p7 = pnand %p1933_p6, %p1927_p3 }
  0x10   :  { %1937 = shalt.err (!%p1934_p7)
}
  0x11   :  { %s2011_s28 = smov 64   ;;  %s2012_s29 = smov 4  }
  0x12   :  { %36 = dma.hbm_to_vmem [thread:$0]  %s2244_s1, 1024, %s31_s19, [#allocation6], %s2011_s28, %s2011_s28, %s2012_s29  }
  0x13   :  { %s2013_s7 = smov [#allocation2]   ;;  %s1938_s11 = scalar_lea.hbm %s2243_s0, 8192 }
  0x14   :  { %s18_s8 = sshll.u32 %s2013_s7, 4  ;;  %p1939_p8 = scmp.ne.s32.totalorder %s2243_s0, %s1938_s11  ;;  %s19_s8 = int_to_ptr.vmem [resolvable:$true] %s18_s8 }
  0x15   :  { %p1942_p9 = scmp.lt.u32.totalorder %s1938_s11, %s2243_s0 }
  0x17   :  { %p1944_p10 = pnand %p1942_p9, %p1939_p8 }
  0x19   :  { %1947 = shalt.err (!%p1944_p10)
}
  0x1a   :  { %s1948_s16 = scalar_lea.vmem %s19_s8, 8192  ;;  %p1953_p12 = scmp.lt.s32.totalorder %s19_s8, %s19_s8 }
  0x1b   :  { %p1949_p11 = scmp.ne.s32.totalorder %s19_s8, %s1948_s16  ;;  %p1954_p13 = scmp.lt.s32.totalorder %s1948_s16, %s1948_s16 }
  0x1d   :  { %p1955_p0 = por %p1954_p13, %p1953_p12 }
  0x1f   :  { %p1956_p1 = pnand %p1955_p0, %p1949_p11 }
  0x21   :  { %1959 = shalt.err (!%p1956_p1)
}
  0x22   :  { %s2014_s1 = smov 128   ;;  %s2015_s17 = smov 8  }
  0x23   :  { %24 = dma.hbm_to_vmem [thread:$0]  %s2243_s0, 8192, %s19_s8, [#allocation3], %s2014_s1, %s2014_s1, %s2015_s17  }
  0x24   :  { %s2016_s20 = smov [#allocation7]   ;;  %s1960_s24 = scalar_lea.hbm %s2246_s3, 1024 }
  0x25   :  { %s44_s21 = sshll.u32 %s2016_s20, 4  ;;  %p1961_p2 = scmp.ne.s32.totalorder %s2246_s3, %s1960_s24  ;;  %s45_s21 = int_to_ptr.vmem [resolvable:$true] %s44_s21 }
  0x26   :  { %p1964_p3 = scmp.lt.u32.totalorder %s1960_s24, %s2246_s3 }
  0x28   :  { %p1966_p4 = pnand %p1964_p3, %p1961_p2 }
  0x2a   :  { %1969 = shalt.err (!%p1966_p4)
}
  0x2b   :  { %s1970_s6 = scalar_lea.vmem %s45_s21, 1024  ;;  %p1975_p6 = scmp.lt.s32.totalorder %s45_s21, %s45_s21 }
  0x2c   :  { %p1971_p5 = scmp.ne.s32.totalorder %s45_s21, %s1970_s6  ;;  %p1976_p7 = scmp.lt.s32.totalorder %s1970_s6, %s1970_s6 }
  0x2e   :  { %p1977_p8 = por %p1976_p7, %p1975_p6 }
  0x30   :  { %p1978_p9 = pnand %p1977_p8, %p1971_p5 }
  0x32   :  { %1981 = shalt.err (!%p1978_p9)
}
  0x33   :  { %50 = dma.hbm_to_vmem [thread:$0]  %s2246_s3, 1024, %s45_s21, [#allocation6], %s2011_s28, %s2011_s28, %s2012_s29  }
  0x34   :  { %2004 = dma.done.wait [#allocation3], 8192  }
  0x35   :  { %2005 = vsyncadd [#allocation3], 4294959104 }
  0x36   :  { %2006 = dma.done.wait [#allocation6], 2048  }
  0x37   :  { %2007 = vsyncadd [#allocation6], 4294965248  ;;  %v1643_v0 = vld [vmem:[#allocation5] sm:$0xff]   ;;  %v1644_v1 = vld [vmem:[#allocation5 + $0x8] sm:$0xff]  }
  0x38   :  { %1475 = vmatprep.subr.bf16.mxu0 %v1643_v0  ;;  %v1645_v2 = vld [vmem:[#allocation5 + $0x10] sm:$0xff]   ;;  %v1646_v3 = vld [vmem:[#allocation5 + $0x18] sm:$0xff]   ;;  %v63_v4 = vld [vmem:[#allocation2] sm:$0xff] }
  0x39   :  { %1476 = vmatpush3.bf16.msra.mxu0 %v1643_v0  ;;  %v64_v5 = vld [vmem:[#allocation2 + $0x8] sm:$0xff]  ;;  %v1647_v7 = vld [vmem:[#allocation5 + $0x20] sm:$0xff]   ;;  %v1649_v9 = vld [vmem:[#allocation5 + $0x30] sm:$0xff]  }
  0x3a   :  { %1477 = vmatprep.subr.bf16.mxu0 %v1644_v1  ;;  %v127_v6 = vpack.c.bf16 %v64_v5, %v63_v4  ;;  %v1648_v8 = vld [vmem:[#allocation5 + $0x28] sm:$0xff]   ;;  %v1650_v10 = vld [vmem:[#allocation5 + $0x38] sm:$0xff]   ;;  %v65_v11 = vld [vmem:[#allocation2 + $0x10] sm:$0xff] }
  0x3b   :  { %v66_v12 = vld [vmem:[#allocation2 + $0x18] sm:$0xff]  ;;  %v67_v13 = vld [vmem:[#allocation2 + $0x20] sm:$0xff]  ;;  %v68_v14 = vld [vmem:[#allocation2 + $0x28] sm:$0xff] }
  0x3c   :  { %1491 = vmatprep.mubr.bf16.mxu0 %v127_v6  ;;  %v128_v15 = vpack.c.bf16 %v66_v12, %v65_v11  ;;  %v1651_v16 = vld [vmem:[#allocation7] sm:$0xff]   ;;  %v129_v17 = vpack.c.bf16 %v68_v14, %v67_v13  ;;  %v1652_v18 = vld [vmem:[#allocation7 + $0x8] sm:$0xff]   ;;  %v69_v19 = vld [vmem:[#allocation2 + $0x30] sm:$0xff] }
  0x3d   :  { %1478 = vmatpush3.bf16.msra.mxu0 %v1644_v1  ;;  %1555 = vmatprep.subr.bf16.mxu1 %v1651_v16  ;;  %v70_v20 = vld [vmem:[#allocation2 + $0x38] sm:$0xff]  ;;  %v1653_v21 = vld [vmem:[#allocation7 + $0x10] sm:$0xff]   ;;  %v71_v22 = vld [vmem:[#allocation2 + $0x40] sm:$0xff] }
  0x3e   :  { %1479 = vmatprep.subr.bf16.mxu0 %v1645_v2  ;;  %1556 = vmatpush3.bf16.msra.mxu1 %v1651_v16  ;;  %v72_v23 = vld [vmem:[#allocation2 + $0x48] sm:$0xff]  ;;  %v130_v24 = vpack.c.bf16 %v70_v20, %v69_v19  ;;  %v1654_v25 = vld [vmem:[#allocation7 + $0x18] sm:$0xff]   ;;  %v1655_v27 = vld [vmem:[#allocation7 + $0x20] sm:$0xff]  }
  0x3f   :  { %1557 = vmatprep.subr.bf16.mxu1 %v1652_v18  ;;  %v131_v26 = vpack.c.bf16 %v72_v23, %v71_v22  ;;  %v73_v28 = vld [vmem:[#allocation2 + $0x50] sm:$0xff]  ;;  %v74_v29 = vld [vmem:[#allocation2 + $0x58] sm:$0xff]  ;;  %v75_v30 = vld [vmem:[#allocation2 + $0x60] sm:$0xff] }
  0x40   :  { %v76_v31 = vld [vmem:[#allocation2 + $0x68] sm:$0xff]  ;;  %v132_v32 = vpack.c.bf16 %v74_v29, %v73_v28  ;;  %v77_v35 = vld [vmem:[#allocation2 + $0x70] sm:$0xff]  ;;  %v78_v36 = vld [vmem:[#allocation2 + $0x78] sm:$0xff] }
  0x41   :  { %1480 = vmatpush3.bf16.msra.mxu0 %v1645_v2  ;;  %v1656_v33 = vld [vmem:[#allocation7 + $0x28] sm:$0xff]   ;;  %v133_v34 = vpack.c.bf16 %v76_v31, %v75_v30  ;;  %v79_v37 = vld [vmem:[#allocation2 + $0x80] sm:$0xff]  ;;  %v134_v39 = vpack.c.bf16 %v78_v36, %v77_v35  ;;  %v81_v41 = vld [vmem:[#allocation2 + $0x90] sm:$0xff] }
  0x42   :  { %1481 = vmatprep.subr.bf16.mxu0 %v1646_v3  ;;  %1558 = vmatpush3.bf16.msra.mxu1 %v1652_v18  ;;  %v80_v38 = vld [vmem:[#allocation2 + $0x88] sm:$0xff]  ;;  %v82_v42 = vld [vmem:[#allocation2 + $0x98] sm:$0xff]  ;;  %v83_v43 = vld [vmem:[#allocation2 + $0xa0] sm:$0xff] }
  0x43   :  { %1559 = vmatprep.subr.bf16.mxu1 %v1653_v21  ;;  %v135_v40 = vpack.c.bf16 %v80_v38, %v79_v37  ;;  %v84_v44 = vld [vmem:[#allocation2 + $0xa8] sm:$0xff]  ;;  %v136_v45 = vpack.c.bf16 %v82_v42, %v81_v41  ;;  %v85_v47 = vld [vmem:[#allocation2 + $0xb0] sm:$0xff]  ;;  %v86_v48 = vld [vmem:[#allocation2 + $0xb8] sm:$0xff] }
  0x44   :  { %v137_v46 = vpack.c.bf16 %v84_v44, %v83_v43  ;;  %v87_v49 = vld [vmem:[#allocation2 + $0xc0] sm:$0xff]  ;;  %v88_v50 = vld [vmem:[#allocation2 + $0xc8] sm:$0xff]  ;;  %v138_v51 = vpack.c.bf16 %v86_v48, %v85_v47  ;;  %v89_v53 = vld [vmem:[#allocation2 + $0xd0] sm:$0xff] }
  0x45   :  { %1482 = vmatpush3.bf16.msra.mxu0 %v1646_v3  ;;  %v139_v52 = vpack.c.bf16 %v88_v50, %v87_v49  ;;  %v90_v54 = vld [vmem:[#allocation2 + $0xd8] sm:$0xff]  ;;  %v91_v55 = vld [vmem:[#allocation2 + $0xe0] sm:$0xff]  ;;  %v92_v56 = vld [vmem:[#allocation2 + $0xe8] sm:$0xff] }
  0x46   :  { %1483 = vmatprep.subr.bf16.mxu0 %v1647_v7  ;;  %1560 = vmatpush3.bf16.msra.mxu1 %v1653_v21  ;;  %v140_v57 = vpack.c.bf16 %v90_v54, %v89_v53  ;;  %v141_v58 = vpack.c.bf16 %v92_v56, %v91_v55  ;;  %v93_v59 = vld [vmem:[#allocation2 + $0xf0] sm:$0xff]  ;;  %v94_v60 = vld [vmem:[#allocation2 + $0xf8] sm:$0xff]  ;;  %v95_v61 = vld [vmem:[#allocation2 + $0x100] sm:$0xff] }
  0x47   :  { %1561 = vmatprep.subr.bf16.mxu1 %v1654_v25  ;;  %v96_v62 = vld [vmem:[#allocation2 + $0x108] sm:$0xff]  ;;  %v142_v63 = vpack.c.bf16 %v94_v60, %v93_v59  ;;  %v97_v1 = vld [vmem:[#allocation2 + $0x110] sm:$0xff]  ;;  %v98_v2 = vld [vmem:[#allocation2 + $0x118] sm:$0xff] }
  0x48   :  { %v143_v0 = vpack.c.bf16 %v96_v62, %v95_v61  ;;  %v99_v3 = vld [vmem:[#allocation2 + $0x120] sm:$0xff]  ;;  %v100_v4 = vld [vmem:[#allocation2 + $0x128] sm:$0xff]  ;;  %v144_v5 = vpack.c.bf16 %v98_v2, %v97_v1  ;;  %v105_v13 = vld [vmem:[#allocation2 + $0x150] sm:$0xff] }
  0x49   :  { %1484 = vmatpush3.bf16.msra.mxu0 %v1647_v7  ;;  %v145_v6 = vpack.c.bf16 %v100_v4, %v99_v3  ;;  %v101_v7 = vld [vmem:[#allocation2 + $0x130] sm:$0xff]  ;;  %v106_v14 = vld [vmem:[#allocation2 + $0x158] sm:$0xff]  ;;  %v108_v16 = vld [vmem:[#allocation2 + $0x168] sm:$0xff] }
  0x4a   :  { %1485 = vmatprep.subr.bf16.mxu0 %v1648_v8  ;;  %1562 = vmatpush3.bf16.msra.mxu1 %v1654_v25  ;;  %v109_v19 = vld [vmem:[#allocation2 + $0x170] sm:$0xff]  ;;  %v110_v20 = vld [vmem:[#allocation2 + $0x178] sm:$0xff]  ;;  %v111_v21 = vld [vmem:[#allocation2 + $0x180] sm:$0xff] }
  0x4b   :  { %1563 = vmatprep.subr.bf16.mxu1 %v1655_v27  ;;  %v112_v22 = vld [vmem:[#allocation2 + $0x188] sm:$0xff]  ;;  %v150_v23 = vpack.c.bf16 %v110_v20, %v109_v19  ;;  %v114_v28 = vld [vmem:[#allocation2 + $0x198] sm:$0xff]  ;;  %v115_v29 = vld [vmem:[#allocation2 + $0x1a0] sm:$0xff] }
  0x4c   :  { %v151_v25 = vpack.c.bf16 %v112_v22, %v111_v21  ;;  %v116_v30 = vld [vmem:[#allocation2 + $0x1a8] sm:$0xff]  ;;  %v119_v35 = vld [vmem:[#allocation2 + $0x1c0] sm:$0xff] }
  0x4d   :  { %1486 = vmatpush3.bf16.msra.mxu0 %v1648_v8  ;;  %v102_v8 = vld [vmem:[#allocation2 + $0x138] sm:$0xff]  ;;  %v120_v36 = vld [vmem:[#allocation2 + $0x1c8] sm:$0xff]  ;;  %v123_v41 = vld [vmem:[#allocation2 + $0x1e0] sm:$0xff] }
  0x4e   :  { %1487 = vmatprep.subr.bf16.mxu0 %v1649_v9  ;;  %1564 = vmatpush3.bf16.msra.mxu1 %v1655_v27  ;;  %v146_v11 = vpack.c.bf16 %v102_v8, %v101_v7  ;;  %v113_v27 = vld [vmem:[#allocation2 + $0x190] sm:$0xff]  ;;  %v155_v38 = vpack.c.bf16 %v120_v36, %v119_v35  ;;  %v124_v42 = vld [vmem:[#allocation2 + $0x1e8] sm:$0xff]  ;;  %v2096_v48 = vld [vmem:[%s2245_s2] ss:$0 sm:$0xff] }
  0x4f   :  { %1565 = vmatprep.subr.bf16.mxu1 %v1656_v33  ;;  %v152_v31 = vpack.c.bf16 %v114_v28, %v113_v27  ;;  %v157_v44 = vpack.c.bf16 %v124_v42, %v123_v41 }
  0x51   :  { %1488 = vmatpush3.bf16.msra.mxu0 %v1649_v9  ;;  %v103_v9 = vld [vmem:[#allocation2 + $0x140] sm:$0xff] }
  0x52   :  { %1489 = vmatprep.subr.bf16.mxu0 %v1650_v10  ;;  %1566 = vmatpush3.bf16.msra.mxu1 %v1656_v33  ;;  %v117_v33 = vld [vmem:[#allocation2 + $0x1b0] sm:$0xff] }
  0x55   :  { %1490 = vmatpush3.bf16.msra.mxu0 %v1650_v10  ;;  %v104_v10 = vld [vmem:[#allocation2 + $0x148] sm:$0xff] }
  0x56   :  { %v147_v12 = vpack.c.bf16 %v104_v10, %v103_v9 }
  0x58   :  { %1492 = vmatmul.mubr.bf16.vlgmr.msra.gmra.mrb[0].mxu0 %v128_v15  ;;  %v107_v15 = vld [vmem:[#allocation2 + $0x160] sm:$0xff] }
  0x59   :  { %1495 = vmatprep.mubr.bf16.mxu0 %v129_v17  ;;  %v148_v17 = vpack.c.bf16 %v106_v14, %v105_v13  ;;  %v149_v18 = vpack.c.bf16 %v108_v16, %v107_v15 }
  0x60   :  { %1496 = vmatmul.mubr.bf16.gmra.mrb[4].mxu0 %v130_v24  ;;  %v1657_v24 = vld [vmem:[#allocation7 + $0x30] sm:$0xff]  }
  0x61   :  { %1499 = vmatprep.mubr.bf16.mxu0 %v131_v26  ;;  %1567 = vmatprep.subr.bf16.mxu1 %v1657_v24  ;;  %v1658_v26 = vld [vmem:[#allocation7 + $0x38] sm:$0xff]  }
  0x62   :  { %1568 = vmatpush3.bf16.msra.mxu1 %v1657_v24 }
  0x63   :  { %1569 = vmatprep.subr.bf16.mxu1 %v1658_v26 }
  0x66   :  { %1570 = vmatpush3.bf16.msra.mxu1 %v1658_v26 }
  0x68   :  { %1500 = vmatmul.mubr.bf16.gmra.mrb[8].mxu0 %v132_v32  ;;  %v153_v32 = vpack.c.bf16 %v116_v30, %v115_v29 }
  0x69   :  { %1503 = vmatprep.mubr.bf16.mxu0 %v133_v34  ;;  %v118_v34 = vld [vmem:[#allocation2 + $0x1b8] sm:$0xff] }
  0x6a   :  { %v154_v37 = vpack.c.bf16 %v118_v34, %v117_v33 }
  0x70   :  { %1504 = vmatmul.mubr.bf16.gmra.mrb[12].mxu0 %v134_v39  ;;  %v121_v39 = vld [vmem:[#allocation2 + $0x1d0] sm:$0xff] }
  0x71   :  { %1507 = vmatprep.mubr.bf16.mxu0 %v135_v40  ;;  %v122_v40 = vld [vmem:[#allocation2 + $0x1d8] sm:$0xff] }
  0x72   :  { %v156_v43 = vpack.c.bf16 %v122_v40, %v121_v39 }
  0x78   :  { %1508 = vmatmul.mubr.bf16.gmra.mrb[16].mxu0 %v136_v45  ;;  %v125_v45 = vld [vmem:[#allocation2 + $0x1f0] sm:$0xff] }
  0x79   :  { %1511 = vmatprep.mubr.bf16.mxu0 %v137_v46  ;;  %v126_v46 = vld [vmem:[#allocation2 + $0x1f8] sm:$0xff] }
  0x7a   :  { %v158_v47 = vpack.c.bf16 %v126_v46, %v125_v45 }
  0x80   :  { %1512 = vmatmul.mubr.bf16.gmra.mrb[20].mxu0 %v138_v51 }
  0x81   :  { %1515 = vmatprep.mubr.bf16.mxu0 %v139_v52 }
  0x88   :  { %1516 = vmatmul.mubr.bf16.gmra.mrb[24].mxu0 %v140_v57 }
  0x89   :  { %1519 = vmatprep.mubr.bf16.mxu0 %v141_v58 }
  0x90   :  { %1520 = vmatmul.mubr.bf16.gmra.mrb[28].mxu0 %v142_v63 }
  0x91   :  { %1523 = vmatprep.mubr.bf16.mxu0 %v143_v0 }
  0x98   :  { %1524 = vmatmul.mubr.bf16.gmra.mrb[32].mxu0 %v144_v5 }
  0x99   :  { %1527 = vmatprep.mubr.bf16.mxu0 %v145_v6 }
  0xa0   :  { %1528 = vmatmul.mubr.bf16.gmra.mrb[36].mxu0 %v146_v11 }
  0xa1   :  { %1531 = vmatprep.mubr.bf16.mxu0 %v147_v12 }
  0xa8   :  { %1532 = vmatmul.mubr.bf16.gmra.mrb[40].mxu0 %v148_v17 }
  0xa9   :  { %1535 = vmatprep.mubr.bf16.mxu0 %v149_v18 }
  0xb0   :  { %1536 = vmatmul.mubr.bf16.gmra.mrb[44].mxu0 %v150_v23 }
  0xb1   :  { %1539 = vmatprep.mubr.bf16.mxu0 %v151_v25 }
  0xb8   :  { %1540 = vmatmul.mubr.bf16.gmra.mrb[48].mxu0 %v152_v31 }
  0xb9   :  { %1543 = vmatprep.mubr.bf16.mxu0 %v153_v32 }
  0xc0   :  { %1544 = vmatmul.mubr.bf16.gmra.mrb[52].mxu0 %v154_v37 }
  0xc1   :  { %1547 = vmatprep.mubr.bf16.mxu0 %v155_v38 }
  0xc8   :  { %1548 = vmatmul.mubr.bf16.gmra.mrb[56].mxu0 %v156_v43 }
  0xc9   :  { %1551 = vmatprep.mubr.bf16.mxu0 %v157_v44 }
  0xd0   :  { %1552 = vmatmul.mubr.bf16.gmra.mrb[60].mxu0 %v158_v47 }
 0x12b   :  { %v1493_v49 = vpop.f32.mrb[0].mxu0 }
 0x12c   :  { %v273_v50 = vadd.f32 %v1493_v49, %v2096_v48  ;;  %v264_v51 = vpop.f32.mrb[1].mxu0 }
 0x12d   :  { %v265_v52 = vadd.f32 %v2096_v48, %v264_v51  ;;  %v1494_v53 = vpop.f32.mrb[2].mxu0 }
 0x12e   :  { %v276_v54 = vadd.f32 %v1494_v53, %v2096_v48  ;;  %v267_v55 = vpop.f32.mrb[3].mxu0  ;;  %v521_v57 = vmax.f32 %v273_v50, 0.0 }
 0x12f   :  { %v268_v56 = vadd.f32 %v2096_v48, %v267_v55  ;;  %v519_v59 = vmax.f32 %v265_v52, 0.0 }
 0x130   :  { %v522_v58 = vmax.f32 %v276_v54, 0.0 }
 0x131   :  { %v520_v60 = vmax.f32 %v268_v56, 0.0 }
 0x132   :  { %v584_v61 = vpack.c.bf16 %v522_v58, %v521_v57 }
 0x133   :  { %v1497_v62 = vpop.f32.mrb[4].mxu0  ;;  %v583_v63 = vpack.c.bf16 %v520_v60, %v519_v59 }
 0x134   :  { %v289_v0 = vadd.f32 %v1497_v62, %v2096_v48  ;;  %v280_v1 = vpop.f32.mrb[5].mxu0 }
 0x135   :  { %v281_v2 = vadd.f32 %v2096_v48, %v280_v1  ;;  %v1498_v3 = vpop.f32.mrb[6].mxu0  ;;  %1571 = vmatprep.mubr.bf16.mxu1 %v583_v63 }
 0x136   :  { %v292_v4 = vadd.f32 %v1498_v3, %v2096_v48  ;;  %v283_v5 = vpop.f32.mrb[7].mxu0  ;;  %1572 = vmatmul.mubr.bf16.vlgmr.msra.gmra.mrb[0].mxu1 %v584_v61  ;;  %v525_v7 = vmax.f32 %v289_v0, 0.0 }
 0x137   :  { %v284_v6 = vadd.f32 %v2096_v48, %v283_v5  ;;  %v523_v9 = vmax.f32 %v281_v2, 0.0 }
 0x138   :  { %v526_v8 = vmax.f32 %v292_v4, 0.0 }
 0x139   :  { %v524_v10 = vmax.f32 %v284_v6, 0.0 }
 0x13a   :  { %v586_v11 = vpack.c.bf16 %v526_v8, %v525_v7 }
 0x13b   :  { %v585_v12 = vpack.c.bf16 %v524_v10, %v523_v9  ;;  %v1501_v13 = vpop.f32.mrb[8].mxu0 }
 0x13c   :  { %v305_v14 = vadd.f32 %v1501_v13, %v2096_v48  ;;  %v296_v15 = vpop.f32.mrb[9].mxu0 }
 0x13d   :  { %v297_v16 = vadd.f32 %v2096_v48, %v296_v15  ;;  %v1502_v17 = vpop.f32.mrb[10].mxu0  ;;  %1575 = vmatprep.mubr.bf16.mxu1 %v585_v12 }
 0x13e   :  { %v308_v18 = vadd.f32 %v1502_v17, %v2096_v48  ;;  %v299_v19 = vpop.f32.mrb[11].mxu0  ;;  %1576 = vmatmul.mubr.bf16.gmra.mrb[4].mxu1 %v586_v11  ;;  %v529_v21 = vmax.f32 %v305_v14, 0.0 }
 0x13f   :  { %v300_v20 = vadd.f32 %v2096_v48, %v299_v19  ;;  %v527_v23 = vmax.f32 %v297_v16, 0.0 }
 0x140   :  { %v530_v22 = vmax.f32 %v308_v18, 0.0 }
 0x141   :  { %v528_v24 = vmax.f32 %v300_v20, 0.0 }
 0x142   :  { %v588_v25 = vpack.c.bf16 %v530_v22, %v529_v21 }
 0x143   :  { %v587_v26 = vpack.c.bf16 %v528_v24, %v527_v23  ;;  %v1505_v27 = vpop.f32.mrb[12].mxu0 }
 0x144   :  { %v321_v28 = vadd.f32 %v1505_v27, %v2096_v48  ;;  %v312_v29 = vpop.f32.mrb[13].mxu0 }
 0x145   :  { %v313_v30 = vadd.f32 %v2096_v48, %v312_v29  ;;  %v1506_v31 = vpop.f32.mrb[14].mxu0  ;;  %1579 = vmatprep.mubr.bf16.mxu1 %v587_v26 }
 0x146   :  { %v324_v32 = vadd.f32 %v1506_v31, %v2096_v48  ;;  %v315_v33 = vpop.f32.mrb[15].mxu0  ;;  %1580 = vmatmul.mubr.bf16.gmra.mrb[8].mxu1 %v588_v25  ;;  %v533_v35 = vmax.f32 %v321_v28, 0.0 }
 0x147   :  { %v316_v34 = vadd.f32 %v2096_v48, %v315_v33  ;;  %v531_v37 = vmax.f32 %v313_v30, 0.0 }
 0x148   :  { %v534_v36 = vmax.f32 %v324_v32, 0.0 }
 0x149   :  { %v532_v38 = vmax.f32 %v316_v34, 0.0 }
 0x14a   :  { %v590_v39 = vpack.c.bf16 %v534_v36, %v533_v35 }
 0x14b   :  { %v589_v40 = vpack.c.bf16 %v532_v38, %v531_v37  ;;  %v1509_v41 = vpop.f32.mrb[16].mxu0 }
 0x14c   :  { %v337_v42 = vadd.f32 %v1509_v41, %v2096_v48  ;;  %v328_v43 = vpop.f32.mrb[17].mxu0 }
 0x14d   :  { %v329_v44 = vadd.f32 %v2096_v48, %v328_v43  ;;  %v1510_v45 = vpop.f32.mrb[18].mxu0  ;;  %1583 = vmatprep.mubr.bf16.mxu1 %v589_v40 }
 0x14e   :  { %v340_v46 = vadd.f32 %v1510_v45, %v2096_v48  ;;  %v331_v47 = vpop.f32.mrb[19].mxu0  ;;  %1584 = vmatmul.mubr.bf16.gmra.mrb[12].mxu1 %v590_v39  ;;  %v537_v50 = vmax.f32 %v337_v42, 0.0 }
 0x14f   :  { %v332_v49 = vadd.f32 %v2096_v48, %v331_v47  ;;  %v535_v52 = vmax.f32 %v329_v44, 0.0 }
 0x150   :  { %v538_v51 = vmax.f32 %v340_v46, 0.0 }
 0x151   :  { %v536_v53 = vmax.f32 %v332_v49, 0.0 }
 0x152   :  { %v592_v54 = vpack.c.bf16 %v538_v51, %v537_v50 }
 0x153   :  { %v591_v55 = vpack.c.bf16 %v536_v53, %v535_v52  ;;  %v1513_v56 = vpop.f32.mrb[20].mxu0 }
 0x154   :  { %v353_v57 = vadd.f32 %v1513_v56, %v2096_v48  ;;  %v344_v58 = vpop.f32.mrb[21].mxu0 }
 0x155   :  { %v345_v59 = vadd.f32 %v2096_v48, %v344_v58  ;;  %v1514_v60 = vpop.f32.mrb[22].mxu0  ;;  %1587 = vmatprep.mubr.bf16.mxu1 %v591_v55 }
 0x156   :  { %v356_v61 = vadd.f32 %v1514_v60, %v2096_v48  ;;  %v347_v62 = vpop.f32.mrb[23].mxu0  ;;  %1588 = vmatmul.mubr.bf16.gmra.mrb[16].mxu1 %v592_v54  ;;  %v541_v0 = vmax.f32 %v353_v57, 0.0 }
 0x157   :  { %v348_v63 = vadd.f32 %v2096_v48, %v347_v62  ;;  %v539_v2 = vmax.f32 %v345_v59, 0.0 }
 0x158   :  { %v542_v1 = vmax.f32 %v356_v61, 0.0 }
 0x159   :  { %v540_v3 = vmax.f32 %v348_v63, 0.0 }
 0x15a   :  { %v594_v4 = vpack.c.bf16 %v542_v1, %v541_v0 }
 0x15b   :  { %v593_v5 = vpack.c.bf16 %v540_v3, %v539_v2  ;;  %v1517_v6 = vpop.f32.mrb[24].mxu0 }
 0x15c   :  { %v369_v7 = vadd.f32 %v1517_v6, %v2096_v48  ;;  %v360_v8 = vpop.f32.mrb[25].mxu0 }
 0x15d   :  { %v361_v9 = vadd.f32 %v2096_v48, %v360_v8  ;;  %v1518_v10 = vpop.f32.mrb[26].mxu0  ;;  %1591 = vmatprep.mubr.bf16.mxu1 %v593_v5 }
 0x15e   :  { %v372_v11 = vadd.f32 %v1518_v10, %v2096_v48  ;;  %v363_v12 = vpop.f32.mrb[27].mxu0  ;;  %1592 = vmatmul.mubr.bf16.gmra.mrb[20].mxu1 %v594_v4  ;;  %v545_v14 = vmax.f32 %v369_v7, 0.0 }
 0x15f   :  { %v364_v13 = vadd.f32 %v2096_v48, %v363_v12  ;;  %v543_v16 = vmax.f32 %v361_v9, 0.0 }
 0x160   :  { %v546_v15 = vmax.f32 %v372_v11, 0.0 }
 0x161   :  { %v544_v17 = vmax.f32 %v364_v13, 0.0 }
 0x162   :  { %v596_v18 = vpack.c.bf16 %v546_v15, %v545_v14 }
 0x163   :  { %v595_v19 = vpack.c.bf16 %v544_v17, %v543_v16  ;;  %v1521_v20 = vpop.f32.mrb[28].mxu0 }
 0x164   :  { %v385_v21 = vadd.f32 %v1521_v20, %v2096_v48  ;;  %v376_v22 = vpop.f32.mrb[29].mxu0 }
 0x165   :  { %v377_v23 = vadd.f32 %v2096_v48, %v376_v22  ;;  %v1522_v24 = vpop.f32.mrb[30].mxu0  ;;  %1595 = vmatprep.mubr.bf16.mxu1 %v595_v19 }
 0x166   :  { %v388_v25 = vadd.f32 %v1522_v24, %v2096_v48  ;;  %v379_v26 = vpop.f32.mrb[31].mxu0  ;;  %1596 = vmatmul.mubr.bf16.gmra.mrb[24].mxu1 %v596_v18  ;;  %v549_v28 = vmax.f32 %v385_v21, 0.0 }
 0x167   :  { %v380_v27 = vadd.f32 %v2096_v48, %v379_v26  ;;  %v547_v30 = vmax.f32 %v377_v23, 0.0 }
 0x168   :  { %v550_v29 = vmax.f32 %v388_v25, 0.0 }
 0x169   :  { %v548_v31 = vmax.f32 %v380_v27, 0.0 }
 0x16a   :  { %v598_v32 = vpack.c.bf16 %v550_v29, %v549_v28 }
 0x16b   :  { %v597_v33 = vpack.c.bf16 %v548_v31, %v547_v30  ;;  %v1525_v34 = vpop.f32.mrb[32].mxu0 }
 0x16c   :  { %v401_v35 = vadd.f32 %v1525_v34, %v2096_v48  ;;  %v392_v36 = vpop.f32.mrb[33].mxu0 }
 0x16d   :  { %v393_v37 = vadd.f32 %v2096_v48, %v392_v36  ;;  %v1526_v38 = vpop.f32.mrb[34].mxu0  ;;  %1599 = vmatprep.mubr.bf16.mxu1 %v597_v33 }
 0x16e   :  { %v404_v39 = vadd.f32 %v1526_v38, %v2096_v48  ;;  %v395_v40 = vpop.f32.mrb[35].mxu0  ;;  %1600 = vmatmul.mubr.bf16.gmra.mrb[28].mxu1 %v598_v32  ;;  %v553_v42 = vmax.f32 %v401_v35, 0.0 }
 0x16f   :  { %v396_v41 = vadd.f32 %v2096_v48, %v395_v40  ;;  %v551_v44 = vmax.f32 %v393_v37, 0.0 }
 0x170   :  { %v554_v43 = vmax.f32 %v404_v39, 0.0 }
 0x171   :  { %v552_v45 = vmax.f32 %v396_v41, 0.0 }
 0x172   :  { %v600_v46 = vpack.c.bf16 %v554_v43, %v553_v42 }
 0x173   :  { %v599_v47 = vpack.c.bf16 %v552_v45, %v551_v44  ;;  %v1529_v49 = vpop.f32.mrb[36].mxu0 }
 0x174   :  { %v417_v50 = vadd.f32 %v1529_v49, %v2096_v48  ;;  %v408_v51 = vpop.f32.mrb[37].mxu0 }
 0x175   :  { %v409_v52 = vadd.f32 %v2096_v48, %v408_v51  ;;  %v1530_v53 = vpop.f32.mrb[38].mxu0  ;;  %1603 = vmatprep.mubr.bf16.mxu1 %v599_v47 }
 0x176   :  { %v420_v54 = vadd.f32 %v1530_v53, %v2096_v48  ;;  %v411_v55 = vpop.f32.mrb[39].mxu0  ;;  %1604 = vmatmul.mubr.bf16.gmra.mrb[32].mxu1 %v600_v46  ;;  %v557_v57 = vmax.f32 %v417_v50, 0.0 }
 0x177   :  { %v412_v56 = vadd.f32 %v2096_v48, %v411_v55  ;;  %v555_v59 = vmax.f32 %v409_v52, 0.0 }
 0x178   :  { %v558_v58 = vmax.f32 %v420_v54, 0.0 }
 0x179   :  { %v556_v60 = vmax.f32 %v412_v56, 0.0 }
 0x17a   :  { %v602_v61 = vpack.c.bf16 %v558_v58, %v557_v57 }
 0x17b   :  { %v601_v62 = vpack.c.bf16 %v556_v60, %v555_v59  ;;  %v1533_v63 = vpop.f32.mrb[40].mxu0 }
 0x17c   :  { %v433_v0 = vadd.f32 %v1533_v63, %v2096_v48  ;;  %v424_v1 = vpop.f32.mrb[41].mxu0 }
 0x17d   :  { %v425_v2 = vadd.f32 %v2096_v48, %v424_v1  ;;  %v1534_v3 = vpop.f32.mrb[42].mxu0  ;;  %1607 = vmatprep.mubr.bf16.mxu1 %v601_v62 }
 0x17e   :  { %v436_v4 = vadd.f32 %v1534_v3, %v2096_v48  ;;  %v427_v5 = vpop.f32.mrb[43].mxu0  ;;  %1608 = vmatmul.mubr.bf16.gmra.mrb[36].mxu1 %v602_v61  ;;  %v561_v7 = vmax.f32 %v433_v0, 0.0 }
 0x17f   :  { %v428_v6 = vadd.f32 %v2096_v48, %v427_v5  ;;  %v559_v9 = vmax.f32 %v425_v2, 0.0 }
 0x180   :  { %v562_v8 = vmax.f32 %v436_v4, 0.0 }
 0x181   :  { %v560_v10 = vmax.f32 %v428_v6, 0.0 }
 0x182   :  { %v604_v11 = vpack.c.bf16 %v562_v8, %v561_v7 }
 0x183   :  { %v603_v12 = vpack.c.bf16 %v560_v10, %v559_v9  ;;  %v1537_v13 = vpop.f32.mrb[44].mxu0 }
 0x184   :  { %v449_v14 = vadd.f32 %v1537_v13, %v2096_v48  ;;  %v440_v15 = vpop.f32.mrb[45].mxu0 }
 0x185   :  { %v441_v16 = vadd.f32 %v2096_v48, %v440_v15  ;;  %v1538_v17 = vpop.f32.mrb[46].mxu0  ;;  %1611 = vmatprep.mubr.bf16.mxu1 %v603_v12 }
 0x186   :  { %v452_v18 = vadd.f32 %v1538_v17, %v2096_v48  ;;  %v443_v19 = vpop.f32.mrb[47].mxu0  ;;  %1612 = vmatmul.mubr.bf16.gmra.mrb[40].mxu1 %v604_v11  ;;  %v565_v21 = vmax.f32 %v449_v14, 0.0 }
 0x187   :  { %v444_v20 = vadd.f32 %v2096_v48, %v443_v19  ;;  %v563_v23 = vmax.f32 %v441_v16, 0.0 }
 0x188   :  { %v566_v22 = vmax.f32 %v452_v18, 0.0 }
 0x189   :  { %v564_v24 = vmax.f32 %v444_v20, 0.0  ;;  %v2165_v20 = vld [vmem:[%s2247_s4] ss:$0 sm:$0xff] }
 0x18a   :  { %v606_v25 = vpack.c.bf16 %v566_v22, %v565_v21 }
 0x18b   :  { %v605_v26 = vpack.c.bf16 %v564_v24, %v563_v23  ;;  %v1541_v27 = vpop.f32.mrb[48].mxu0 }
 0x18c   :  { %v465_v28 = vadd.f32 %v1541_v27, %v2096_v48  ;;  %v456_v29 = vpop.f32.mrb[49].mxu0 }
 0x18d   :  { %v457_v30 = vadd.f32 %v2096_v48, %v456_v29  ;;  %v1542_v31 = vpop.f32.mrb[50].mxu0  ;;  %1615 = vmatprep.mubr.bf16.mxu1 %v605_v26 }
 0x18e   :  { %v468_v32 = vadd.f32 %v1542_v31, %v2096_v48  ;;  %v459_v33 = vpop.f32.mrb[51].mxu0  ;;  %1616 = vmatmul.mubr.bf16.gmra.mrb[44].mxu1 %v606_v25  ;;  %v569_v35 = vmax.f32 %v465_v28, 0.0 }
 0x18f   :  { %v460_v34 = vadd.f32 %v2096_v48, %v459_v33  ;;  %v567_v37 = vmax.f32 %v457_v30, 0.0 }
 0x190   :  { %v570_v36 = vmax.f32 %v468_v32, 0.0 }
 0x191   :  { %v568_v38 = vmax.f32 %v460_v34, 0.0 }
 0x192   :  { %v608_v39 = vpack.c.bf16 %v570_v36, %v569_v35 }
 0x193   :  { %v607_v40 = vpack.c.bf16 %v568_v38, %v567_v37  ;;  %v1545_v41 = vpop.f32.mrb[52].mxu0 }
 0x194   :  { %v481_v42 = vadd.f32 %v1545_v41, %v2096_v48  ;;  %v472_v43 = vpop.f32.mrb[53].mxu0 }
 0x195   :  { %v473_v44 = vadd.f32 %v2096_v48, %v472_v43  ;;  %v1546_v45 = vpop.f32.mrb[54].mxu0  ;;  %1619 = vmatprep.mubr.bf16.mxu1 %v607_v40 }
 0x196   :  { %v484_v46 = vadd.f32 %v1546_v45, %v2096_v48  ;;  %v475_v47 = vpop.f32.mrb[55].mxu0  ;;  %1620 = vmatmul.mubr.bf16.gmra.mrb[48].mxu1 %v608_v39  ;;  %v573_v50 = vmax.f32 %v481_v42, 0.0 }
 0x197   :  { %v476_v49 = vadd.f32 %v2096_v48, %v475_v47  ;;  %v571_v52 = vmax.f32 %v473_v44, 0.0 }
 0x198   :  { %v574_v51 = vmax.f32 %v484_v46, 0.0 }
 0x199   :  { %v572_v53 = vmax.f32 %v476_v49, 0.0 }
 0x19a   :  { %v610_v54 = vpack.c.bf16 %v574_v51, %v573_v50 }
 0x19b   :  { %v609_v55 = vpack.c.bf16 %v572_v53, %v571_v52  ;;  %v1549_v56 = vpop.f32.mrb[56].mxu0 }
 0x19c   :  { %v497_v57 = vadd.f32 %v1549_v56, %v2096_v48  ;;  %v488_v58 = vpop.f32.mrb[57].mxu0 }
 0x19d   :  { %v489_v59 = vadd.f32 %v2096_v48, %v488_v58  ;;  %v1550_v60 = vpop.f32.mrb[58].mxu0  ;;  %1623 = vmatprep.mubr.bf16.mxu1 %v609_v55 }
 0x19e   :  { %v500_v61 = vadd.f32 %v1550_v60, %v2096_v48  ;;  %v491_v62 = vpop.f32.mrb[59].mxu0  ;;  %1624 = vmatmul.mubr.bf16.gmra.mrb[52].mxu1 %v610_v54  ;;  %v577_v0 = vmax.f32 %v497_v57, 0.0 }
 0x19f   :  { %v492_v63 = vadd.f32 %v2096_v48, %v491_v62  ;;  %v575_v2 = vmax.f32 %v489_v59, 0.0 }
 0x1a0   :  { %v578_v1 = vmax.f32 %v500_v61, 0.0 }
 0x1a1   :  { %v576_v3 = vmax.f32 %v492_v63, 0.0 }
 0x1a2   :  { %v612_v4 = vpack.c.bf16 %v578_v1, %v577_v0 }
 0x1a3   :  { %v611_v5 = vpack.c.bf16 %v576_v3, %v575_v2  ;;  %v1553_v6 = vpop.f32.mrb[60].mxu0 }
 0x1a4   :  { %v513_v7 = vadd.f32 %v1553_v6, %v2096_v48  ;;  %v504_v8 = vpop.f32.mrb[61].mxu0 }
 0x1a5   :  { %v505_v9 = vadd.f32 %v2096_v48, %v504_v8  ;;  %v1554_v10 = vpop.f32.mrb[62].mxu0  ;;  %1627 = vmatprep.mubr.bf16.mxu1 %v611_v5 }
 0x1a6   :  { %v516_v11 = vadd.f32 %v1554_v10, %v2096_v48  ;;  %v507_v12 = vpop.f32.mrb[63].mxu0  ;;  %1628 = vmatmul.mubr.bf16.gmra.mrb[56].mxu1 %v612_v4  ;;  %v581_v14 = vmax.f32 %v513_v7, 0.0 }
 0x1a7   :  { %v508_v13 = vadd.f32 %v2096_v48, %v507_v12  ;;  %v579_v16 = vmax.f32 %v505_v9, 0.0 }
 0x1a8   :  { %v582_v15 = vmax.f32 %v516_v11, 0.0 }
 0x1a9   :  { %v580_v17 = vmax.f32 %v508_v13, 0.0 }
 0x1aa   :  { %v614_v18 = vpack.c.bf16 %v582_v15, %v581_v14 }
 0x1ab   :  { %v613_v19 = vpack.c.bf16 %v580_v17, %v579_v16 }
 0x1ad   :  { %1631 = vmatprep.mubr.bf16.mxu1 %v613_v19 }
 0x1ae   :  { %1632 = vmatmul.mubr.bf16.gmra.mrb[60].mxu1 %v614_v18 }
 0x209   :  { %v1573_v21 = vpop.f32.mrb[0].mxu1 }
 0x20a   :  { %v729_v22 = vadd.f32 %v1573_v21, %v2165_v20  ;;  %v720_v23 = vpop.f32.mrb[1].mxu1 }
 0x20b   :  { %v721_v24 = vadd.f32 %v2165_v20, %v720_v23  ;;  %v1574_v48 = vpop.f32.mrb[2].mxu1 }
 0x20c   :  { %v977_v25 = vsub.f32 0.0, %v729_v22  ;;  %v732_v26 = vadd.f32 %v1574_v48, %v2165_v20  ;;  %v723_v27 = vpop.f32.mrb[3].mxu1 }
 0x20d   :  { %v975_v28 = vsub.f32 0.0, %v721_v24  ;;  %v724_v29 = vadd.f32 %v2165_v20, %v723_v27 }
 0x20e   :  { %v1043_v30 = vmul.f32 1.442695, %v977_v25  ;;  %v978_v31 = vsub.f32 0.0, %v732_v26 }
 0x20f   :  { %v1039_v32 = vmul.f32 1.442695, %v975_v28  ;;  %v976_v33 = vsub.f32 0.0, %v724_v29 }
 0x210   :  { %1659 = vpow2.f32 %v1043_v30  ;;  %v1045_v34 = vmul.f32 1.442695, %v978_v31 }
 0x211   :  { %1661 = vpow2.f32 %v1039_v32  ;;  %v1041_v35 = vmul.f32 1.442695, %v976_v33  ;;  %v1577_v36 = vpop.f32.mrb[4].mxu1 }
 0x212   :  { %1663 = vpow2.f32 %v1045_v34  ;;  %v745_v37 = vadd.f32 %v1577_v36, %v2165_v20  ;;  %v736_v38 = vpop.f32.mrb[5].mxu1 }
 0x213   :  { %1665 = vpow2.f32 %v1041_v35  ;;  %v737_v39 = vadd.f32 %v2165_v20, %v736_v38  ;;  %v1578_v40 = vpop.f32.mrb[6].mxu1 }
 0x214   :  { %v981_v41 = vsub.f32 0.0, %v745_v37  ;;  %v748_v42 = vadd.f32 %v1578_v40, %v2165_v20  ;;  %v739_v43 = vpop.f32.mrb[7].mxu1 }
 0x215   :  { %v979_v44 = vsub.f32 0.0, %v737_v39  ;;  %v740_v45 = vadd.f32 %v2165_v20, %v739_v43 }
 0x216   :  { %v1051_v46 = vmul.f32 1.442695, %v981_v41  ;;  %v982_v47 = vsub.f32 0.0, %v748_v42 }
 0x217   :  { %v1047_v49 = vmul.f32 1.442695, %v979_v44  ;;  %v980_v50 = vsub.f32 0.0, %v740_v45 }
 0x218   :  { %1667 = vpow2.f32 %v1051_v46  ;;  %v1053_v51 = vmul.f32 1.442695, %v982_v47 }
 0x219   :  { %1669 = vpow2.f32 %v1047_v49  ;;  %v1049_v52 = vmul.f32 1.442695, %v980_v50  ;;  %v1581_v53 = vpop.f32.mrb[8].mxu1 }
 0x21a   :  { %v1660_v54 = vpop.eup %1659  ;;  %1671 = vpow2.f32 %v1053_v51  ;;  %v761_v55 = vadd.f32 %v1581_v53, %v2165_v20  ;;  %v752_v56 = vpop.f32.mrb[9].mxu1 }
 0x21b   :  { %v1662_v57 = vpop.eup %1661  ;;  %v1169_v58 = vadd.f32 1.0, %v1660_v54  ;;  %1673 = vpow2.f32 %v1049_v52  ;;  %v753_v59 = vadd.f32 %v2165_v20, %v752_v56  ;;  %v1582_v60 = vpop.f32.mrb[10].mxu1 }
 0x21c   :  { %v1664_v61 = vpop.eup %1663  ;;  %v1167_v62 = vadd.f32 1.0, %v1662_v57  ;;  %v985_v63 = vsub.f32 0.0, %v761_v55  ;;  %v764_v0 = vadd.f32 %v1582_v60, %v2165_v20  ;;  %v755_v1 = vpop.f32.mrb[11].mxu1 }
 0x21d   :  { %v1666_v2 = vpop.eup %1665  ;;  %1675 = vrcp.f32 %v1169_v58  ;;  %v1170_v3 = vadd.f32 1.0, %v1664_v61  ;;  %v983_v4 = vsub.f32 0.0, %v753_v59  ;;  %v756_v5 = vadd.f32 %v2165_v20, %v755_v1 }
 0x21e   :  { %1677 = vrcp.f32 %v1167_v62  ;;  %v1168_v6 = vadd.f32 1.0, %v1666_v2  ;;  %v1059_v7 = vmul.f32 1.442695, %v985_v63  ;;  %v986_v8 = vsub.f32 0.0, %v764_v0 }
 0x21f   :  { %1679 = vrcp.f32 %v1170_v3  ;;  %v1055_v9 = vmul.f32 1.442695, %v983_v4  ;;  %v984_v10 = vsub.f32 0.0, %v756_v5 }
 0x220   :  { %1681 = vrcp.f32 %v1168_v6  ;;  %v1061_v11 = vmul.f32 1.442695, %v986_v8 }
 0x221   :  { %1683 = vpow2.f32 %v1059_v7  ;;  %v1057_v12 = vmul.f32 1.442695, %v984_v10  ;;  %v1585_v13 = vpop.f32.mrb[12].mxu1 }
 0x222   :  { %v1668_v14 = vpop.eup %1667  ;;  %1685 = vpow2.f32 %v1055_v9  ;;  %v777_v15 = vadd.f32 %v1585_v13, %v2165_v20  ;;  %v768_v16 = vpop.f32.mrb[13].mxu1 }
 0x223   :  { %v1670_v17 = vpop.eup %1669  ;;  %v1173_v18 = vadd.f32 1.0, %v1668_v14  ;;  %1687 = vpow2.f32 %v1061_v11  ;;  %v769_v19 = vadd.f32 %v2165_v20, %v768_v16  ;;  %v1586_v21 = vpop.f32.mrb[14].mxu1 }
 0x224   :  { %v1672_v22 = vpop.eup %1671  ;;  %v1171_v23 = vadd.f32 1.0, %v1670_v17  ;;  %1689 = vpow2.f32 %v1057_v12  ;;  %v989_v24 = vsub.f32 0.0, %v777_v15  ;;  %v780_v48 = vadd.f32 %v1586_v21, %v2165_v20  ;;  %v771_v25 = vpop.f32.mrb[15].mxu1 }
 0x225   :  { %v1674_v26 = vpop.eup %1673  ;;  %1691 = vrcp.f32 %v1173_v18  ;;  %v1174_v27 = vadd.f32 1.0, %v1672_v22  ;;  %v987_v28 = vsub.f32 0.0, %v769_v19  ;;  %v772_v29 = vadd.f32 %v2165_v20, %v771_v25 }
 0x226   :  { %1693 = vrcp.f32 %v1171_v23  ;;  %v1172_v30 = vadd.f32 1.0, %v1674_v26  ;;  %v1067_v31 = vmul.f32 1.442695, %v989_v24  ;;  %v990_v32 = vsub.f32 0.0, %v780_v48 }
 0x227   :  { %v1676_v33 = vpop.eup %1675  ;;  %1695 = vrcp.f32 %v1174_v27  ;;  %v1063_v34 = vmul.f32 1.442695, %v987_v28  ;;  %v988_v35 = vsub.f32 0.0, %v772_v29 }
 0x228   :  { %v1678_v36 = vpop.eup %1677  ;;  %1297 = vst [vmem:[#allocation8 + $0x10] sm:$0xff] %v1676_v33  ;;  %1697 = vrcp.f32 %v1172_v30  ;;  %v1069_v37 = vmul.f32 1.442695, %v990_v32 }
 0x229   :  { %v1680_v38 = vpop.eup %1679  ;;  %1295 = vst [vmem:[#allocation8] sm:$0xff] %v1678_v36  ;;  %1699 = vpow2.f32 %v1067_v31  ;;  %v1065_v39 = vmul.f32 1.442695, %v988_v35  ;;  %v1589_v40 = vpop.f32.mrb[16].mxu1 }
 0x22a   :  { %v1682_v41 = vpop.eup %1681  ;;  %1298 = vst [vmem:[#allocation8 + $0x18] sm:$0xff] %v1680_v38  ;;  %1701 = vpow2.f32 %v1063_v34  ;;  %v793_v42 = vadd.f32 %v1589_v40, %v2165_v20  ;;  %v784_v43 = vpop.f32.mrb[17].mxu1 }
 0x22b   :  { %v1684_v44 = vpop.eup %1683  ;;  %1296 = vst [vmem:[#allocation8 + $0x8] sm:$0xff] %v1682_v41  ;;  %1703 = vpow2.f32 %v1069_v37  ;;  %v785_v45 = vadd.f32 %v2165_v20, %v784_v43  ;;  %v1590_v46 = vpop.f32.mrb[18].mxu1 }
 0x22c   :  { %v1686_v47 = vpop.eup %1685  ;;  %v1177_v49 = vadd.f32 1.0, %v1684_v44  ;;  %1705 = vpow2.f32 %v1065_v39  ;;  %v993_v50 = vsub.f32 0.0, %v793_v42  ;;  %v796_v51 = vadd.f32 %v1590_v46, %v2165_v20  ;;  %v787_v52 = vpop.f32.mrb[19].mxu1 }
 0x22d   :  { %v1688_v53 = vpop.eup %1687  ;;  %v1175_v54 = vadd.f32 1.0, %v1686_v47  ;;  %v991_v55 = vsub.f32 0.0, %v785_v45  ;;  %v788_v56 = vadd.f32 %v2165_v20, %v787_v52 }
 0x22e   :  { %v1690_v57 = vpop.eup %1689  ;;  %1707 = vrcp.f32 %v1177_v49  ;;  %v1178_v58 = vadd.f32 1.0, %v1688_v53  ;;  %v1075_v59 = vmul.f32 1.442695, %v993_v50  ;;  %v994_v60 = vsub.f32 0.0, %v796_v51 }
 0x22f   :  { %v1692_v61 = vpop.eup %1691  ;;  %1709 = vrcp.f32 %v1175_v54  ;;  %v1176_v62 = vadd.f32 1.0, %v1690_v57  ;;  %v1071_v63 = vmul.f32 1.442695, %v991_v55  ;;  %v992_v0 = vsub.f32 0.0, %v788_v56 }
 0x230   :  { %v1694_v1 = vpop.eup %1693  ;;  %1301 = vst [vmem:[#allocation8 + $0x30] sm:$0xff] %v1692_v61  ;;  %1711 = vrcp.f32 %v1178_v58  ;;  %v1077_v2 = vmul.f32 1.442695, %v994_v60 }
 0x231   :  { %v1696_v3 = vpop.eup %1695  ;;  %1299 = vst [vmem:[#allocation8 + $0x20] sm:$0xff] %v1694_v1  ;;  %1713 = vrcp.f32 %v1176_v62  ;;  %v1073_v4 = vmul.f32 1.442695, %v992_v0  ;;  %v1593_v5 = vpop.f32.mrb[20].mxu1 }
 0x232   :  { %v1698_v6 = vpop.eup %1697  ;;  %1302 = vst [vmem:[#allocation8 + $0x38] sm:$0xff] %v1696_v3  ;;  %1715 = vpow2.f32 %v1075_v59  ;;  %v809_v7 = vadd.f32 %v1593_v5, %v2165_v20  ;;  %v800_v8 = vpop.f32.mrb[21].mxu1 }
 0x233   :  { %v1700_v9 = vpop.eup %1699  ;;  %1300 = vst [vmem:[#allocation8 + $0x28] sm:$0xff] %v1698_v6  ;;  %1717 = vpow2.f32 %v1071_v63  ;;  %v801_v10 = vadd.f32 %v2165_v20, %v800_v8  ;;  %v1594_v11 = vpop.f32.mrb[22].mxu1 }
 0x234   :  { %v1702_v12 = vpop.eup %1701  ;;  %v1181_v13 = vadd.f32 1.0, %v1700_v9  ;;  %1719 = vpow2.f32 %v1077_v2  ;;  %v997_v14 = vsub.f32 0.0, %v809_v7  ;;  %v812_v15 = vadd.f32 %v1594_v11, %v2165_v20  ;;  %v803_v16 = vpop.f32.mrb[23].mxu1 }
 0x235   :  { %v1704_v17 = vpop.eup %1703  ;;  %v1179_v18 = vadd.f32 1.0, %v1702_v12  ;;  %1721 = vpow2.f32 %v1073_v4  ;;  %v995_v19 = vsub.f32 0.0, %v801_v10  ;;  %v804_v21 = vadd.f32 %v2165_v20, %v803_v16 }
 0x236   :  { %v1706_v22 = vpop.eup %1705  ;;  %1723 = vrcp.f32 %v1181_v13  ;;  %v1182_v23 = vadd.f32 1.0, %v1704_v17  ;;  %v1083_v24 = vmul.f32 1.442695, %v997_v14  ;;  %v998_v48 = vsub.f32 0.0, %v812_v15 }
 0x237   :  { %1725 = vrcp.f32 %v1179_v18  ;;  %v1180_v25 = vadd.f32 1.0, %v1706_v22  ;;  %v1079_v26 = vmul.f32 1.442695, %v995_v19  ;;  %v996_v27 = vsub.f32 0.0, %v804_v21 }
 0x238   :  { %v1708_v28 = vpop.eup %1707  ;;  %1727 = vrcp.f32 %v1182_v23  ;;  %v1085_v29 = vmul.f32 1.442695, %v998_v48 }
 0x239   :  { %v1710_v30 = vpop.eup %1709  ;;  %1305 = vst [vmem:[#allocation8 + $0x50] sm:$0xff] %v1708_v28  ;;  %1729 = vrcp.f32 %v1180_v25  ;;  %v1081_v31 = vmul.f32 1.442695, %v996_v27  ;;  %v1597_v32 = vpop.f32.mrb[24].mxu1 }
 0x23a   :  { %v1712_v33 = vpop.eup %1711  ;;  %1303 = vst [vmem:[#allocation8 + $0x40] sm:$0xff] %v1710_v30  ;;  %1731 = vpow2.f32 %v1083_v24  ;;  %v825_v34 = vadd.f32 %v1597_v32, %v2165_v20  ;;  %v816_v35 = vpop.f32.mrb[25].mxu1 }
 0x23b   :  { %v1714_v36 = vpop.eup %1713  ;;  %1306 = vst [vmem:[#allocation8 + $0x58] sm:$0xff] %v1712_v33  ;;  %1733 = vpow2.f32 %v1079_v26  ;;  %v817_v37 = vadd.f32 %v2165_v20, %v816_v35  ;;  %v1598_v38 = vpop.f32.mrb[26].mxu1 }
 0x23c   :  { %v1716_v39 = vpop.eup %1715  ;;  %1304 = vst [vmem:[#allocation8 + $0x48] sm:$0xff] %v1714_v36  ;;  %1735 = vpow2.f32 %v1085_v29  ;;  %v1001_v40 = vsub.f32 0.0, %v825_v34  ;;  %v828_v41 = vadd.f32 %v1598_v38, %v2165_v20  ;;  %v819_v42 = vpop.f32.mrb[27].mxu1 }
 0x23d   :  { %v1718_v43 = vpop.eup %1717  ;;  %v1185_v44 = vadd.f32 1.0, %v1716_v39  ;;  %1737 = vpow2.f32 %v1081_v31  ;;  %v999_v45 = vsub.f32 0.0, %v817_v37  ;;  %v820_v46 = vadd.f32 %v2165_v20, %v819_v42 }
 0x23e   :  { %v1720_v47 = vpop.eup %1719  ;;  %v1183_v49 = vadd.f32 1.0, %v1718_v43  ;;  %v1002_v50 = vsub.f32 0.0, %v828_v41  ;;  %v1091_v53 = vmul.f32 1.442695, %v1001_v40 }
 0x23f   :  { %v1722_v51 = vpop.eup %1721  ;;  %1739 = vrcp.f32 %v1185_v44  ;;  %v1186_v52 = vadd.f32 1.0, %v1720_v47  ;;  %v1000_v54 = vsub.f32 0.0, %v820_v46  ;;  %v1087_v57 = vmul.f32 1.442695, %v999_v45 }
 0x240   :  { %v1724_v55 = vpop.eup %1723  ;;  %1741 = vrcp.f32 %v1183_v49  ;;  %v1184_v56 = vadd.f32 1.0, %v1722_v51  ;;  %v1093_v59 = vmul.f32 1.442695, %v1002_v50 }
 0x241   :  { %v1726_v58 = vpop.eup %1725  ;;  %1309 = vst [vmem:[#allocation8 + $0x70] sm:$0xff] %v1724_v55  ;;  %1743 = vrcp.f32 %v1186_v52  ;;  %v1601_v60 = vpop.f32.mrb[28].mxu1  ;;  %v1089_v62 = vmul.f32 1.442695, %v1000_v54 }
 0x242   :  { %v1728_v61 = vpop.eup %1727  ;;  %1307 = vst [vmem:[#allocation8 + $0x60] sm:$0xff] %v1726_v58  ;;  %1745 = vrcp.f32 %v1184_v56  ;;  %v841_v63 = vadd.f32 %v1601_v60, %v2165_v20  ;;  %v832_v0 = vpop.f32.mrb[29].mxu1 }
 0x243   :  { %v1730_v1 = vpop.eup %1729  ;;  %1310 = vst [vmem:[#allocation8 + $0x78] sm:$0xff] %v1728_v61  ;;  %1747 = vpow2.f32 %v1091_v53  ;;  %v833_v2 = vadd.f32 %v2165_v20, %v832_v0  ;;  %v1602_v3 = vpop.f32.mrb[30].mxu1 }
 0x244   :  { %v1732_v4 = vpop.eup %1731  ;;  %1308 = vst [vmem:[#allocation8 + $0x68] sm:$0xff] %v1730_v1  ;;  %1749 = vpow2.f32 %v1087_v57  ;;  %v1005_v5 = vsub.f32 0.0, %v841_v63  ;;  %v844_v6 = vadd.f32 %v1602_v3, %v2165_v20  ;;  %v835_v7 = vpop.f32.mrb[31].mxu1 }
 0x245   :  { %v1734_v8 = vpop.eup %1733  ;;  %v1189_v9 = vadd.f32 1.0, %v1732_v4  ;;  %1751 = vpow2.f32 %v1093_v59  ;;  %v1003_v10 = vsub.f32 0.0, %v833_v2  ;;  %v836_v11 = vadd.f32 %v2165_v20, %v835_v7 }
 0x246   :  { %v1736_v12 = vpop.eup %1735  ;;  %v1187_v13 = vadd.f32 1.0, %v1734_v8  ;;  %1753 = vpow2.f32 %v1089_v62  ;;  %v1006_v14 = vsub.f32 0.0, %v844_v6  ;;  %v1099_v17 = vmul.f32 1.442695, %v1005_v5 }
 0x247   :  { %v1738_v15 = vpop.eup %1737  ;;  %1755 = vrcp.f32 %v1189_v9  ;;  %v1190_v16 = vadd.f32 1.0, %v1736_v12  ;;  %v1004_v18 = vsub.f32 0.0, %v836_v11  ;;  %v1095_v21 = vmul.f32 1.442695, %v1003_v10 }
 0x248   :  { %1757 = vrcp.f32 %v1187_v13  ;;  %v1188_v19 = vadd.f32 1.0, %v1738_v15  ;;  %v1101_v23 = vmul.f32 1.442695, %v1006_v14 }
 0x249   :  { %v1740_v22 = vpop.eup %1739  ;;  %1759 = vrcp.f32 %v1190_v16  ;;  %v1605_v24 = vpop.f32.mrb[32].mxu1  ;;  %v1097_v25 = vmul.f32 1.442695, %v1004_v18 }
 0x24a   :  { %v1742_v48 = vpop.eup %1741  ;;  %1313 = vst [vmem:[#allocation8 + $0x90] sm:$0xff] %v1740_v22  ;;  %1761 = vrcp.f32 %v1188_v19  ;;  %v857_v26 = vadd.f32 %v1605_v24, %v2165_v20  ;;  %v848_v27 = vpop.f32.mrb[33].mxu1 }
 0x24b   :  { %v1744_v28 = vpop.eup %1743  ;;  %1311 = vst [vmem:[#allocation8 + $0x80] sm:$0xff] %v1742_v48  ;;  %1763 = vpow2.f32 %v1099_v17  ;;  %v849_v29 = vadd.f32 %v2165_v20, %v848_v27  ;;  %v1606_v30 = vpop.f32.mrb[34].mxu1 }
 0x24c   :  { %v1746_v31 = vpop.eup %1745  ;;  %1314 = vst [vmem:[#allocation8 + $0x98] sm:$0xff] %v1744_v28  ;;  %1765 = vpow2.f32 %v1095_v21  ;;  %v1009_v32 = vsub.f32 0.0, %v857_v26  ;;  %v860_v33 = vadd.f32 %v1606_v30, %v2165_v20  ;;  %v851_v34 = vpop.f32.mrb[35].mxu1 }
 0x24d   :  { %v1748_v35 = vpop.eup %1747  ;;  %1312 = vst [vmem:[#allocation8 + $0x88] sm:$0xff] %v1746_v31  ;;  %1767 = vpow2.f32 %v1101_v23  ;;  %v1007_v36 = vsub.f32 0.0, %v849_v29  ;;  %v852_v37 = vadd.f32 %v2165_v20, %v851_v34 }
 0x24e   :  { %v1750_v38 = vpop.eup %1749  ;;  %v1193_v39 = vadd.f32 1.0, %v1748_v35  ;;  %1769 = vpow2.f32 %v1097_v25  ;;  %v1010_v40 = vsub.f32 0.0, %v860_v33  ;;  %v1107_v46 = vmul.f32 1.442695, %v1009_v32 }
 0x24f   :  { %v1752_v41 = vpop.eup %1751  ;;  %v1191_v42 = vadd.f32 1.0, %v1750_v38  ;;  %v1008_v43 = vsub.f32 0.0, %v852_v37  ;;  %v1103_v50 = vmul.f32 1.442695, %v1007_v36 }
 0x250   :  { %v1754_v44 = vpop.eup %1753  ;;  %1771 = vrcp.f32 %v1193_v39  ;;  %v1194_v45 = vadd.f32 1.0, %v1752_v41  ;;  %v1109_v53 = vmul.f32 1.442695, %v1010_v40 }
 0x251   :  { %v1756_v47 = vpop.eup %1755  ;;  %1773 = vrcp.f32 %v1191_v42  ;;  %v1192_v49 = vadd.f32 1.0, %v1754_v44  ;;  %v1609_v51 = vpop.f32.mrb[36].mxu1  ;;  %v1105_v57 = vmul.f32 1.442695, %v1008_v43 }
 0x252   :  { %v1758_v52 = vpop.eup %1757  ;;  %1317 = vst [vmem:[#allocation8 + $0xb0] sm:$0xff] %v1756_v47  ;;  %1775 = vrcp.f32 %v1194_v45  ;;  %v873_v54 = vadd.f32 %v1609_v51, %v2165_v20  ;;  %v864_v55 = vpop.f32.mrb[37].mxu1 }
 0x253   :  { %v1760_v56 = vpop.eup %1759  ;;  %1315 = vst [vmem:[#allocation8 + $0xa0] sm:$0xff] %v1758_v52  ;;  %1777 = vrcp.f32 %v1192_v49  ;;  %v865_v58 = vadd.f32 %v2165_v20, %v864_v55  ;;  %v1610_v59 = vpop.f32.mrb[38].mxu1 }
 0x254   :  { %v1762_v60 = vpop.eup %1761  ;;  %1318 = vst [vmem:[#allocation8 + $0xb8] sm:$0xff] %v1760_v56  ;;  %1779 = vpow2.f32 %v1107_v46  ;;  %v1013_v61 = vsub.f32 0.0, %v873_v54  ;;  %v876_v62 = vadd.f32 %v1610_v59, %v2165_v20  ;;  %v867_v63 = vpop.f32.mrb[39].mxu1 }
 0x255   :  { %v1764_v0 = vpop.eup %1763  ;;  %1316 = vst [vmem:[#allocation8 + $0xa8] sm:$0xff] %v1762_v60  ;;  %1781 = vpow2.f32 %v1103_v50  ;;  %v1011_v1 = vsub.f32 0.0, %v865_v58  ;;  %v868_v2 = vadd.f32 %v2165_v20, %v867_v63 }
 0x256   :  { %v1766_v3 = vpop.eup %1765  ;;  %v1197_v4 = vadd.f32 1.0, %v1764_v0  ;;  %1783 = vpow2.f32 %v1109_v53  ;;  %v1014_v5 = vsub.f32 0.0, %v876_v62  ;;  %v1115_v11 = vmul.f32 1.442695, %v1013_v61 }
 0x257   :  { %v1768_v6 = vpop.eup %1767  ;;  %v1195_v7 = vadd.f32 1.0, %v1766_v3  ;;  %1785 = vpow2.f32 %v1105_v57  ;;  %v1012_v8 = vsub.f32 0.0, %v868_v2  ;;  %v1111_v13 = vmul.f32 1.442695, %v1011_v1 }
 0x258   :  { %v1770_v9 = vpop.eup %1769  ;;  %1787 = vrcp.f32 %v1197_v4  ;;  %v1198_v10 = vadd.f32 1.0, %v1768_v6  ;;  %v1117_v16 = vmul.f32 1.442695, %v1014_v5 }
 0x259   :  { %1789 = vrcp.f32 %v1195_v7  ;;  %v1196_v12 = vadd.f32 1.0, %v1770_v9  ;;  %v1613_v14 = vpop.f32.mrb[40].mxu1  ;;  %v1113_v21 = vmul.f32 1.442695, %v1012_v8 }
 0x25a   :  { %v1772_v15 = vpop.eup %1771  ;;  %1791 = vrcp.f32 %v1198_v10  ;;  %v889_v17 = vadd.f32 %v1613_v14, %v2165_v20  ;;  %v880_v18 = vpop.f32.mrb[41].mxu1 }
 0x25b   :  { %v1774_v19 = vpop.eup %1773  ;;  %1321 = vst [vmem:[#allocation8 + $0xd0] sm:$0xff] %v1772_v15  ;;  %1793 = vrcp.f32 %v1196_v12  ;;  %v881_v22 = vadd.f32 %v2165_v20, %v880_v18  ;;  %v1614_v23 = vpop.f32.mrb[42].mxu1 }
 0x25c   :  { %v1776_v24 = vpop.eup %1775  ;;  %1319 = vst [vmem:[#allocation8 + $0xc0] sm:$0xff] %v1774_v19  ;;  %1795 = vpow2.f32 %v1115_v11  ;;  %v1017_v48 = vsub.f32 0.0, %v889_v17  ;;  %v892_v25 = vadd.f32 %v1614_v23, %v2165_v20  ;;  %v883_v26 = vpop.f32.mrb[43].mxu1 }
 0x25d   :  { %v1778_v27 = vpop.eup %1777  ;;  %1322 = vst [vmem:[#allocation8 + $0xd8] sm:$0xff] %v1776_v24  ;;  %1797 = vpow2.f32 %v1111_v13  ;;  %v1015_v28 = vsub.f32 0.0, %v881_v22  ;;  %v884_v29 = vadd.f32 %v2165_v20, %v883_v26 }
 0x25e   :  { %v1780_v30 = vpop.eup %1779  ;;  %1320 = vst [vmem:[#allocation8 + $0xc8] sm:$0xff] %v1778_v27  ;;  %1799 = vpow2.f32 %v1117_v16  ;;  %v1123_v31 = vmul.f32 1.442695, %v1017_v48  ;;  %v1018_v32 = vsub.f32 0.0, %v892_v25 }
 0x25f   :  { %v1782_v33 = vpop.eup %1781  ;;  %v1201_v34 = vadd.f32 1.0, %v1780_v30  ;;  %1801 = vpow2.f32 %v1113_v21  ;;  %v1016_v35 = vsub.f32 0.0, %v884_v29  ;;  %v1119_v40 = vmul.f32 1.442695, %v1015_v28 }
 0x260   :  { %v1784_v36 = vpop.eup %1783  ;;  %v1199_v37 = vadd.f32 1.0, %v1782_v33  ;;  %1803 = vpow2.f32 %v1123_v31  ;;  %v1125_v44 = vmul.f32 1.442695, %v1018_v32 }
 0x261   :  { %v1786_v38 = vpop.eup %1785  ;;  %1805 = vrcp.f32 %v1201_v34  ;;  %v1202_v39 = vadd.f32 1.0, %v1784_v36  ;;  %v1617_v41 = vpop.f32.mrb[44].mxu1  ;;  %v1121_v49 = vmul.f32 1.442695, %v1016_v35 }
 0x262   :  { %v1788_v42 = vpop.eup %1787  ;;  %1807 = vrcp.f32 %v1199_v37  ;;  %v1200_v43 = vadd.f32 1.0, %v1786_v38  ;;  %v905_v45 = vadd.f32 %v1617_v41, %v2165_v20  ;;  %v896_v46 = vpop.f32.mrb[45].mxu1 }
 0x263   :  { %v1790_v47 = vpop.eup %1789  ;;  %1325 = vst [vmem:[#allocation8 + $0xf0] sm:$0xff] %v1788_v42  ;;  %1809 = vrcp.f32 %v1202_v39  ;;  %v897_v50 = vadd.f32 %v2165_v20, %v896_v46  ;;  %v1618_v51 = vpop.f32.mrb[46].mxu1 }
 0x264   :  { %v1792_v52 = vpop.eup %1791  ;;  %1323 = vst [vmem:[#allocation8 + $0xe0] sm:$0xff] %v1790_v47  ;;  %1811 = vrcp.f32 %v1200_v43  ;;  %v1021_v53 = vsub.f32 0.0, %v905_v45  ;;  %v908_v54 = vadd.f32 %v1618_v51, %v2165_v20  ;;  %v899_v55 = vpop.f32.mrb[47].mxu1 }
 0x265   :  { %v1794_v56 = vpop.eup %1793  ;;  %1326 = vst [vmem:[#allocation8 + $0xf8] sm:$0xff] %v1792_v52  ;;  %1813 = vpow2.f32 %v1119_v40  ;;  %v900_v57 = vadd.f32 %v2165_v20, %v899_v55  ;;  %v1019_v60 = vsub.f32 0.0, %v897_v50 }
 0x266   :  { %v1796_v58 = vpop.eup %1795  ;;  %1324 = vst [vmem:[#allocation8 + $0xe8] sm:$0xff] %v1794_v56  ;;  %1815 = vpow2.f32 %v1125_v44  ;;  %v1131_v59 = vmul.f32 1.442695, %v1021_v53  ;;  %v1022_v63 = vsub.f32 0.0, %v908_v54 }
 0x267   :  { %v1798_v61 = vpop.eup %1797  ;;  %v1205_v62 = vadd.f32 1.0, %v1796_v58  ;;  %1817 = vpow2.f32 %v1121_v49  ;;  %v1020_v2 = vsub.f32 0.0, %v900_v57  ;;  %v1127_v8 = vmul.f32 1.442695, %v1019_v60 }
 0x268   :  { %v1800_v0 = vpop.eup %1799  ;;  %v1203_v1 = vadd.f32 1.0, %v1798_v61  ;;  %1819 = vpow2.f32 %v1131_v59  ;;  %v1133_v13 = vmul.f32 1.442695, %v1022_v63 }
 0x269   :  { %v1802_v3 = vpop.eup %1801  ;;  %1821 = vrcp.f32 %v1205_v62  ;;  %v1206_v4 = vadd.f32 1.0, %v1800_v0  ;;  %v1621_v5 = vpop.f32.mrb[48].mxu1  ;;  %v1129_v17 = vmul.f32 1.442695, %v1020_v2 }
 0x26a   :  { %v1804_v6 = vpop.eup %1803  ;;  %1823 = vrcp.f32 %v1203_v1  ;;  %v1204_v7 = vadd.f32 1.0, %v1802_v3  ;;  %v921_v9 = vadd.f32 %v1621_v5, %v2165_v20  ;;  %v912_v10 = vpop.f32.mrb[49].mxu1 }
 0x26b   :  { %v1806_v11 = vpop.eup %1805  ;;  %1825 = vrcp.f32 %v1206_v4  ;;  %v1209_v12 = vadd.f32 1.0, %v1804_v6  ;;  %v913_v14 = vadd.f32 %v2165_v20, %v912_v10  ;;  %v1622_v15 = vpop.f32.mrb[50].mxu1 }
 0x26c   :  { %v1808_v16 = vpop.eup %1807  ;;  %1329 = vst [vmem:[#allocation8 + $0x110] sm:$0xff] %v1806_v11  ;;  %1827 = vrcp.f32 %v1204_v7  ;;  %v1025_v18 = vsub.f32 0.0, %v921_v9  ;;  %v924_v19 = vadd.f32 %v1622_v15, %v2165_v20  ;;  %v915_v21 = vpop.f32.mrb[51].mxu1 }
 0x26d   :  { %v1810_v22 = vpop.eup %1809  ;;  %1327 = vst [vmem:[#allocation8 + $0x100] sm:$0xff] %v1808_v16  ;;  %1829 = vrcp.f32 %v1209_v12  ;;  %v916_v23 = vadd.f32 %v2165_v20, %v915_v21  ;;  %v1023_v25 = vsub.f32 0.0, %v913_v14  ;;  %v1915_v12 = vld [vmem:[%s2247_s4] ss:$0 sm:$0xff]  ;;  %s2017_s4 = smov [#allocation8]  }
 0x26e   :  { %v1812_v24 = vpop.eup %1811  ;;  %1330 = vst [vmem:[#allocation8 + $0x118] sm:$0xff] %v1810_v22  ;;  %1831 = vpow2.f32 %v1127_v8  ;;  %v1139_v48 = vmul.f32 1.442695, %v1025_v18  ;;  %v1026_v27 = vsub.f32 0.0, %v924_v19  ;;  %s1364_s10 = sshll.u32 %s2017_s4, 4  ;;  %s1365_s10 = int_to_ptr.vmem [resolvable:$true] %s1364_s10 }
 0x26f   :  { %v1814_v26 = vpop.eup %1813  ;;  %1328 = vst [vmem:[#allocation8 + $0x108] sm:$0xff] %v1812_v24  ;;  %1833 = vpow2.f32 %v1133_v13  ;;  %v1024_v30 = vsub.f32 0.0, %v916_v23  ;;  %v1135_v36 = vmul.f32 1.442695, %v1023_v25  ;;  %s1982_s11 = scalar_lea.vmem %s1365_s10, 8192  ;;  %p1987_p11 = scmp.lt.s32.totalorder %s1365_s10, %s1365_s10 }
 0x270   :  { %v1816_v28 = vpop.eup %1815  ;;  %v1207_v29 = vadd.f32 1.0, %v1814_v26  ;;  %1835 = vpow2.f32 %v1129_v17  ;;  %v1141_v41 = vmul.f32 1.442695, %v1026_v27  ;;  %p1983_p10 = scmp.ne.s32.totalorder %s1365_s10, %s1982_s11  ;;  %p1988_p12 = scmp.lt.s32.totalorder %s1982_s11, %s1982_s11 }
 0x271   :  { %v1818_v31 = vpop.eup %1817  ;;  %v1210_v32 = vadd.f32 1.0, %v1816_v28  ;;  %1837 = vpow2.f32 %v1139_v48  ;;  %v1625_v33 = vpop.f32.mrb[52].mxu1  ;;  %v1137_v45 = vmul.f32 1.442695, %v1024_v30 }
 0x272   :  { %v1820_v34 = vpop.eup %1819  ;;  %1839 = vrcp.f32 %v1207_v29  ;;  %v1208_v35 = vadd.f32 1.0, %v1818_v31  ;;  %v937_v37 = vadd.f32 %v1625_v33, %v2165_v20  ;;  %v928_v38 = vpop.f32.mrb[53].mxu1  ;;  %p1989_p13 = por %p1988_p12, %p1987_p11 }
 0x273   :  { %v1822_v39 = vpop.eup %1821  ;;  %1841 = vrcp.f32 %v1210_v32  ;;  %v1213_v40 = vadd.f32 1.0, %v1820_v34  ;;  %v929_v42 = vadd.f32 %v2165_v20, %v928_v38  ;;  %v1626_v43 = vpop.f32.mrb[54].mxu1 }
 0x274   :  { %v1824_v44 = vpop.eup %1823  ;;  %1333 = vst [vmem:[#allocation8 + $0x130] sm:$0xff] %v1822_v39  ;;  %1843 = vrcp.f32 %v1208_v35  ;;  %v1029_v46 = vsub.f32 0.0, %v937_v37  ;;  %v940_v47 = vadd.f32 %v1626_v43, %v2165_v20  ;;  %v931_v49 = vpop.f32.mrb[55].mxu1  ;;  %p1990_p0 = pnand %p1989_p13, %p1983_p10 }
 0x275   :  { %v1826_v50 = vpop.eup %1825  ;;  %1331 = vst [vmem:[#allocation8 + $0x120] sm:$0xff] %v1824_v44  ;;  %1845 = vrcp.f32 %v1213_v40  ;;  %v1027_v51 = vsub.f32 0.0, %v929_v42  ;;  %v932_v52 = vadd.f32 %v2165_v20, %v931_v49 }
 0x276   :  { %v1828_v53 = vpop.eup %1827  ;;  %1334 = vst [vmem:[#allocation8 + $0x138] sm:$0xff] %v1826_v50  ;;  %1847 = vpow2.f32 %v1135_v36  ;;  %v1147_v54 = vmul.f32 1.442695, %v1029_v46  ;;  %v1030_v55 = vsub.f32 0.0, %v940_v47 }
 0x277   :  { %v1830_v56 = vpop.eup %1829  ;;  %1332 = vst [vmem:[#allocation8 + $0x128] sm:$0xff] %v1828_v53  ;;  %1849 = vpow2.f32 %v1141_v41  ;;  %v1143_v57 = vmul.f32 1.442695, %v1027_v51  ;;  %v1028_v58 = vsub.f32 0.0, %v932_v52 }
 0x278   :  { %v1832_v59 = vpop.eup %1831  ;;  %1337 = vst [vmem:[#allocation8 + $0x150] sm:$0xff] %v1830_v56  ;;  %1851 = vpow2.f32 %v1137_v45  ;;  %v1149_v1 = vmul.f32 1.442695, %v1030_v55 }
 0x279   :  { %v1834_v60 = vpop.eup %1833  ;;  %v1211_v61 = vadd.f32 1.0, %v1832_v59  ;;  %1853 = vpow2.f32 %v1147_v54  ;;  %v1629_v62 = vpop.f32.mrb[56].mxu1  ;;  %v1145_v6 = vmul.f32 1.442695, %v1028_v58 }
 0x27a   :  { %v1836_v63 = vpop.eup %1835  ;;  %v1214_v0 = vadd.f32 1.0, %v1834_v60  ;;  %1855 = vpow2.f32 %v1143_v57  ;;  %v953_v2 = vadd.f32 %v1629_v62, %v2165_v20  ;;  %v944_v3 = vpop.f32.mrb[57].mxu1 }
 0x27b   :  { %v1838_v4 = vpop.eup %1837  ;;  %1857 = vrcp.f32 %v1211_v61  ;;  %v1212_v5 = vadd.f32 1.0, %v1836_v63  ;;  %v945_v7 = vadd.f32 %v2165_v20, %v944_v3  ;;  %v1630_v8 = vpop.f32.mrb[58].mxu1 }
 0x27c   :  { %v1840_v9 = vpop.eup %1839  ;;  %1859 = vrcp.f32 %v1214_v0  ;;  %v1217_v10 = vadd.f32 1.0, %v1838_v4  ;;  %v1033_v11 = vsub.f32 0.0, %v953_v2  ;;  %v956_v13 = vadd.f32 %v1915_v12, %v1630_v8  ;;  %v947_v14 = vpop.f32.mrb[59].mxu1 }
 0x27d   :  { %v1842_v15 = vpop.eup %1841  ;;  %1335 = vst [vmem:[#allocation8 + $0x140] sm:$0xff] %v1840_v9  ;;  %1861 = vrcp.f32 %v1212_v5  ;;  %v1031_v16 = vsub.f32 0.0, %v945_v7  ;;  %v948_v17 = vadd.f32 %v1915_v12, %v947_v14 }
 0x27e   :  { %v1844_v18 = vpop.eup %1843  ;;  %1338 = vst [vmem:[#allocation8 + $0x158] sm:$0xff] %v1842_v15  ;;  %1863 = vrcp.f32 %v1217_v10  ;;  %v1155_v20 = vmul.f32 1.442695, %v1033_v11  ;;  %v1034_v19 = vsub.f32 0.0, %v956_v13 }
 0x27f   :  { %v1846_v21 = vpop.eup %1845  ;;  %1336 = vst [vmem:[#allocation8 + $0x148] sm:$0xff] %v1844_v18  ;;  %1865 = vpow2.f32 %v1149_v1  ;;  %v1151_v22 = vmul.f32 1.442695, %v1031_v16  ;;  %v1032_v23 = vsub.f32 0.0, %v948_v17 }
 0x280   :  { %v1848_v24 = vpop.eup %1847  ;;  %1341 = vst [vmem:[#allocation8 + $0x170] sm:$0xff] %v1846_v21  ;;  %1867 = vpow2.f32 %v1145_v6  ;;  %v1157_v29 = vmul.f32 1.442695, %v1034_v19 }
 0x281   :  { %v1850_v48 = vpop.eup %1849  ;;  %v1215_v25 = vadd.f32 1.0, %v1848_v24  ;;  %1869 = vpow2.f32 %v1155_v20  ;;  %v1633_v26 = vpop.f32.mrb[60].mxu1  ;;  %v1153_v34 = vmul.f32 1.442695, %v1032_v23 }
 0x282   :  { %v1852_v27 = vpop.eup %1851  ;;  %v1218_v28 = vadd.f32 1.0, %v1850_v48  ;;  %1871 = vpow2.f32 %v1151_v22  ;;  %v969_v30 = vadd.f32 %v1915_v12, %v1633_v26  ;;  %v960_v31 = vpop.f32.mrb[61].mxu1 }
 0x283   :  { %v1854_v32 = vpop.eup %1853  ;;  %1873 = vrcp.f32 %v1215_v25  ;;  %v1216_v33 = vadd.f32 1.0, %v1852_v27  ;;  %v961_v35 = vadd.f32 %v1915_v12, %v960_v31  ;;  %v1634_v36 = vpop.f32.mrb[62].mxu1 }
 0x284   :  { %v1856_v37 = vpop.eup %1855  ;;  %1875 = vrcp.f32 %v1218_v28  ;;  %v1221_v38 = vadd.f32 1.0, %v1854_v32  ;;  %v1037_v39 = vsub.f32 0.0, %v969_v30  ;;  %v972_v40 = vadd.f32 %v1915_v12, %v1634_v36  ;;  %v963_v41 = vpop.f32.mrb[63].mxu1 }
 0x285   :  { %v1858_v42 = vpop.eup %1857  ;;  %1877 = vrcp.f32 %v1216_v33  ;;  %v1219_v43 = vadd.f32 1.0, %v1856_v37  ;;  %v1035_v44 = vsub.f32 0.0, %v961_v35  ;;  %v964_v45 = vadd.f32 %v1915_v12, %v963_v41 }
 0x286   :  { %v1860_v46 = vpop.eup %1859  ;;  %1339 = vst [vmem:[#allocation8 + $0x160] sm:$0xff] %v1858_v42  ;;  %1879 = vrcp.f32 %v1221_v38  ;;  %v1163_v47 = vmul.f32 1.442695, %v1037_v39  ;;  %v1038_v52 = vsub.f32 0.0, %v972_v40 }
 0x287   :  { %v1862_v49 = vpop.eup %1861  ;;  %1342 = vst [vmem:[#allocation8 + $0x178] sm:$0xff] %v1860_v46  ;;  %1881 = vrcp.f32 %v1219_v43  ;;  %v1159_v50 = vmul.f32 1.442695, %v1035_v44  ;;  %v1036_v54 = vsub.f32 0.0, %v964_v45 }
 0x288   :  { %v1864_v51 = vpop.eup %1863  ;;  %1340 = vst [vmem:[#allocation8 + $0x168] sm:$0xff] %v1862_v49  ;;  %1883 = vpow2.f32 %v1157_v29  ;;  %v1165_v61 = vmul.f32 1.442695, %v1038_v52 }
 0x289   :  { %v1866_v53 = vpop.eup %1865  ;;  %1345 = vst [vmem:[#allocation8 + $0x190] sm:$0xff] %v1864_v51  ;;  %1885 = vpow2.f32 %v1153_v34  ;;  %v1161_v0 = vmul.f32 1.442695, %v1036_v54 }
 0x28a   :  { %v1868_v55 = vpop.eup %1867  ;;  %v1222_v56 = vadd.f32 1.0, %v1866_v53  ;;  %1887 = vpow2.f32 %v1163_v47 }
 0x28b   :  { %v1870_v57 = vpop.eup %1869  ;;  %v1220_v58 = vadd.f32 1.0, %v1868_v55  ;;  %1889 = vpow2.f32 %v1159_v50 }
 0x28c   :  { %v1872_v59 = vpop.eup %1871  ;;  %1891 = vrcp.f32 %v1222_v56  ;;  %v1225_v60 = vadd.f32 1.0, %v1870_v57 }
 0x28d   :  { %v1874_v62 = vpop.eup %1873  ;;  %1893 = vrcp.f32 %v1220_v58  ;;  %v1223_v63 = vadd.f32 1.0, %v1872_v59 }
 0x28e   :  { %v1876_v1 = vpop.eup %1875  ;;  %1343 = vst [vmem:[#allocation8 + $0x180] sm:$0xff] %v1874_v62  ;;  %1895 = vrcp.f32 %v1225_v60 }
 0x28f   :  { %v1878_v2 = vpop.eup %1877  ;;  %1346 = vst [vmem:[#allocation8 + $0x198] sm:$0xff] %v1876_v1  ;;  %1897 = vrcp.f32 %v1223_v63 }
 0x290   :  { %v1880_v3 = vpop.eup %1879  ;;  %1344 = vst [vmem:[#allocation8 + $0x188] sm:$0xff] %v1878_v2  ;;  %1899 = vpow2.f32 %v1165_v61 }
 0x291   :  { %v1882_v4 = vpop.eup %1881  ;;  %1349 = vst [vmem:[#allocation8 + $0x1b0] sm:$0xff] %v1880_v3  ;;  %1901 = vpow2.f32 %v1161_v0 }
 0x292   :  { %v1884_v5 = vpop.eup %1883  ;;  %1347 = vst [vmem:[#allocation8 + $0x1a0] sm:$0xff] %v1882_v4 }
 0x293   :  { %v1886_v6 = vpop.eup %1885  ;;  %v1226_v7 = vadd.f32 1.0, %v1884_v5 }
 0x294   :  { %v1888_v8 = vpop.eup %1887  ;;  %v1224_v9 = vadd.f32 1.0, %v1886_v6 }
 0x295   :  { %v1890_v10 = vpop.eup %1889  ;;  %1903 = vrcp.f32 %v1226_v7  ;;  %v1229_v11 = vadd.f32 1.0, %v1888_v8 }
 0x296   :  { %v1892_v12 = vpop.eup %1891  ;;  %1905 = vrcp.f32 %v1224_v9  ;;  %v1227_v13 = vadd.f32 1.0, %v1890_v10 }
 0x297   :  { %v1894_v14 = vpop.eup %1893  ;;  %1350 = vst [vmem:[#allocation8 + $0x1b8] sm:$0xff] %v1892_v12  ;;  %1907 = vrcp.f32 %v1229_v11 }
 0x298   :  { %v1896_v15 = vpop.eup %1895  ;;  %1348 = vst [vmem:[#allocation8 + $0x1a8] sm:$0xff] %v1894_v14  ;;  %1909 = vrcp.f32 %v1227_v13 }
 0x299   :  { %v1898_v16 = vpop.eup %1897  ;;  %1353 = vst [vmem:[#allocation8 + $0x1d0] sm:$0xff] %v1896_v15 }
 0x29a   :  { %v1900_v17 = vpop.eup %1899  ;;  %1351 = vst [vmem:[#allocation8 + $0x1c0] sm:$0xff] %v1898_v16 }
 0x29b   :  { %v1902_v18 = vpop.eup %1901  ;;  %v1230_v20 = vadd.f32 1.0, %v1900_v17 }
 0x29c   :  { %v1228_v19 = vadd.f32 1.0, %v1902_v18 }
 0x29d   :  { %1911 = vrcp.f32 %v1230_v20 }
 0x29e   :  { %1913 = vrcp.f32 %v1228_v19 }
 0x29f   :  { %v1904_v21 = vpop.eup %1903 }
 0x2a0   :  { %v1906_v22 = vpop.eup %1905  ;;  %1354 = vst [vmem:[#allocation8 + $0x1d8] sm:$0xff] %v1904_v21 }
 0x2a1   :  { %v1908_v23 = vpop.eup %1907  ;;  %1352 = vst [vmem:[#allocation8 + $0x1c8] sm:$0xff] %v1906_v22 }
 0x2a2   :  { %v1910_v24 = vpop.eup %1909  ;;  %1357 = vst [vmem:[#allocation8 + $0x1f0] sm:$0xff] %v1908_v23 }
 0x2a3   :  { %1355 = vst [vmem:[#allocation8 + $0x1e0] sm:$0xff] %v1910_v24 }
 0x2a7   :  { %v1912_v48 = vpop.eup %1911 }
 0x2a8   :  { %v1914_v25 = vpop.eup %1913  ;;  %1358 = vst [vmem:[#allocation8 + $0x1f8] sm:$0xff] %v1912_v48 }
 0x2a9   :  { %1356 = vst [vmem:[#allocation8 + $0x1e8] sm:$0xff] %v1914_v25 }
 0x2aa   :  { %1993 = shalt.err (!%p1990_p0)
}
 0x2ab   :  { %s1994_s14 = scalar_lea.hbm %s2248_s5, 8192 }
 0x2ac   :  { %p1995_p1 = scmp.ne.s32.totalorder %s2248_s5, %s1994_s14  ;;  %p1998_p2 = scmp.lt.u32.totalorder %s1994_s14, %s2248_s5 }
 0x2ae   :  { %p2000_p3 = pnand %p1998_p2, %p1995_p1 }
 0x2b0   :  { %2003 = shalt.err (!%p2000_p3)
}
 0x2b1   :  { %1370 = dma.vmem_to_hbm [thread:$0]  %s1365_s10, 8192, %s2248_s5, [#allocation4], %s2014_s1, %s2014_s1, %s2015_s17  }
 0x2b2   :  { %2008 = dma.done.wait [#allocation4], 8192  }
 0x2b3   :  { %2009 = vsyncadd [#allocation4], 4294959104 }
 0x2b4   :  { %1374 = vsyncpa [#allocation3], 1 }
 0x2b5   :  { %1375 = vsyncpa [#allocation6], 1 }
 0x2b6   :  { %1376 = vsyncpa [#allocation4], 1 }

</bundles_post_ra>
